<compile_context>
chip_gen: v5e
topology: v5e:2x2
jax: 0.10.0
libtpu: 0.0.40
codegen_flags: <defaults>
</compile_context>

<pallas_src>
import jax
import jax.numpy as jnp
from jax import lax
from jax.experimental import pallas as pl
from jax.experimental.pallas import tpu as pltpu


def osblock_kernel(xm_ref, xt_ref, xb_ref, w1_ref, b1_ref, w2_ref, b2_ref,
                   w3_ref, wd_ref, b3_ref, out_ref):
    _, Sh, W, Cin = xm_ref.shape
    Cmid = w1_ref.shape[1]
    TC = b2_ref.shape[1]          # T * Cmid (fused branch axis)
    T = TC // Cmid
    Cout_p = out_ref.shape[3]
    Ms = Sh * W                   # output rows in this strip
    Mh = (Sh + 2) * W             # rows incl. the 1-row halo above and below

    i = pl.program_id(1)
    last = pl.num_programs(1) - 1

    # Assemble the haloed input strip as flat rows; single bf16 cast.
    xh = jnp.concatenate(
        [xt_ref[...].reshape(W, Cin),
         xm_ref[...].reshape(Ms, Cin),
         xb_ref[...].reshape(W, Cin)], axis=0).astype(jnp.bfloat16)

    # conv1 (1x1, BN scale folded) + bias + ReLU over the haloed strip.
    x1 = jnp.dot(xh, w1_ref[...], preferred_element_type=jnp.float32)
    x1 = jnp.maximum(x1 + b1_ref[...], 0.0)

    # Zero the halo rows that fall outside the image (SAME zero padding of
    # x1), then cast to bf16 exactly once (feeds all 9 taps).
    row = lax.broadcasted_iota(jnp.int32, (Mh, 1), 0)
    pad_row = jnp.logical_or(jnp.logical_and(row < W, i == 0),
                             jnp.logical_and(row >= Mh - W, i == last))
    x1b = jnp.where(pad_row, 0.0, x1).astype(jnp.bfloat16)

    # im2col: one zero row of padding at each end turns every (dy, dx) tap
    # into a static row-shifted slice of the flat strip; the left/right image
    # edges are handled with two column masks. The taps are concatenated
    # along channels so the 3x3 conv is ONE MXU matmul with K = 9*Cmid and
    # all tap accumulation happens in the MXU f32 accumulator.
    zrow = jnp.zeros((1, Cmid), jnp.bfloat16)
    x1p = jnp.concatenate([zrow, x1b, zrow], axis=0)      # [(Sh+2)*W + 2, Cmid]
    wcol = lax.broadcasted_iota(jnp.int32, (Ms, 1), 0) % W
    not_left = wcol > 0
    not_right = wcol < W - 1
    taps = []
    for dy in range(3):
        for dx in range(3):
            start = dy * W + dx
            tap = x1p[start:start + Ms, :]
            if dx == 0:
                tap = jnp.where(not_left, tap, 0.0)
            elif dx == 2:
                tap = jnp.where(not_right, tap, 0.0)
            taps.append(tap)
    patches = jnp.concatenate(taps, axis=1)               # [Ms, 9*Cmid] bf16

    # conv2: all T branches fused along the output axis (BN scale and the
    # 1/T branch average already folded into w2/b2), bias + ReLU.
    z = jnp.dot(patches, w2_ref[...], preferred_element_type=jnp.float32)
    z = jnp.maximum(z + b2_ref[...], 0.0)                  # [Ms, T*Cmid]

    # Branch sum BEFORE conv3 (T-1 lane-local adds) keeps conv3's K at Cmid.
    zs = z[:, 0:Cmid]
    for t in range(1, T):
        zs = zs + z[:, t * Cmid:(t + 1) * Cmid]

    # conv3 + downsample identity (both 1x1, BN folded), bias + ReLU; the
    # downsample dot reuses the resident bf16 input rows of the main strip.
    xmid_b = xh[W:W + Ms, :]
    y = jnp.dot(zs.astype(jnp.bfloat16), w3_ref[...],
                preferred_element_type=jnp.float32)
    y = y + jnp.dot(xmid_b, wd_ref[...], preferred_element_type=jnp.float32)
    y = jnp.maximum(y + b3_ref[...], 0.0)
    out_ref[...] = y.reshape(1, Sh, W, Cout_p).astype(out_ref.dtype)


def prepare_osblock_params(p, lane=128):
    """Fold BN, fuse the T branches into im2col layout, maybe pad Cout.

    Call once per parameter set and reuse the result across forwards."""
    T = p["w2"].shape[0]
    Cin, Cmid = p["w1"].shape
    Cout = p["w3"].shape[1]
    # Lane-pad Cout only when it is large AND misaligned; padding a tiny Cout
    # (e.g. the toy Cout=8) would inflate HBM writeback for no benefit.
    if Cout % lane == 0 or Cout < lane:
        Cout_p = Cout
    else:
        Cout_p = ((Cout + lane - 1) // lane) * lane

    # conv1: fold BN scale into the weight, keep the shift as a bias.
    w1 = (p["w1"] * p["bn1_s"]).astype(jnp.bfloat16)              # [Cin, Cmid]
    b1 = p["bn1_b"].reshape(1, Cmid).astype(jnp.float32)

    # conv2: fuse T branches along the output axis; fold BN scale and the 1/T
    # branch average into weight/bias (ReLU(z)/T == ReLU(z/T)); lay the weight
    # out for im2col: rows ordered (dy, dx, cin), columns (t, cout).
    s2 = p["bn2_s"].reshape(T, 1, 1, 1, Cmid) / T
    w2 = p["w2"] * s2                                             # [T,3,3,Cmid,Cmid]
    w2 = jnp.transpose(w2, (1, 2, 3, 0, 4)).reshape(9 * Cmid, T * Cmid)
    w2 = w2.astype(jnp.bfloat16)
    b2 = (p["bn2_b"].reshape(T, Cmid) / T).reshape(1, T * Cmid).astype(jnp.float32)

    # conv3 / downsample: fold BN scales, sum the two BN shifts into one bias.
    w3 = p["w3"] * p["bn3_s"]                                     # [Cmid, Cout]
    wd = p["wd"] * p["bnd_s"]                                     # [Cin, Cout]
    b3 = (p["bn3_b"] + p["bnd_b"]).reshape(1, Cout).astype(jnp.float32)
    pad = Cout_p - Cout
    if pad:
        w3 = jnp.pad(w3, ((0, 0), (0, pad)))
        wd = jnp.pad(wd, ((0, 0), (0, pad)))
        b3 = jnp.pad(b3, ((0, 0), (0, pad)))
    return dict(w1=w1, b1=b1, w2=w2, b2=b2,
                w3=w3.astype(jnp.bfloat16), wd=wd.astype(jnp.bfloat16), b3=b3,
                cout=Cout, cout_p=Cout_p, cmid=Cmid, t=T)


def osblock_pallas(x, prep, *, strip_rows=8, out_dtype=jnp.bfloat16,
                   trim_padding=True):
    N, H, W, Cin = x.shape
    Cmid, T = prep["cmid"], prep["t"]
    Cout, Cout_p = prep["cout"], prep["cout_p"]
    TC = T * Cmid
    if out_dtype is None:
        out_dtype = x.dtype

    # Strip height: the largest divisor of H not exceeding strip_rows, so
    # per-step intermediates stay bounded and the grid has enough steps to
    # pipeline DMA against compute and to shard across TensorCores.
    sh = max(d for d in range(1, min(strip_rows, H) + 1) if H % d == 0)
    n_strips = H // sh

    # Per-generation VMEM budget: ~48 MiB on v7x (64 MiB physical), ~96 MiB on
    # v5e/v6e (128 MiB physical).
    try:
        vmem_cap = pltpu.get_tpu_info().vmem_capacity_bytes
    except Exception:
        vmem_cap = 64 * 1024 * 1024
    vmem_limit = min((vmem_cap * 3) // 4, 100 * 1024 * 1024)

    out = pl.pallas_call(
        osblock_kernel,
        out_shape=jax.ShapeDtypeStruct((N, H, W, Cout_p), out_dtype),
        grid=(N, n_strips),
        in_specs=[
            # main strip rows [i*sh, i*sh + sh)
            pl.BlockSpec((1, sh, W, Cin), lambda n, i: (n, i, 0, 0)),
            # 1-row halo above (clamped at the image border; zeroed in-kernel)
            pl.BlockSpec((1, 1, W, Cin),
                         lambda n, i: (n, jnp.maximum(i * sh - 1, 0), 0, 0)),
            # 1-row halo below (clamped at the image border; zeroed in-kernel)
            pl.BlockSpec((1, 1, W, Cin),
                         lambda n, i: (n, jnp.minimum(i * sh + sh, H - 1), 0, 0)),
            # weights / biases: small, constant index maps keep them resident
            pl.BlockSpec((Cin, Cmid), lambda n, i: (0, 0)),
            pl.BlockSpec((1, Cmid), lambda n, i: (0, 0)),
            pl.BlockSpec((9 * Cmid, TC), lambda n, i: (0, 0)),
            pl.BlockSpec((1, TC), lambda n, i: (0, 0)),
            pl.BlockSpec((Cmid, Cout_p), lambda n, i: (0, 0)),
            pl.BlockSpec((Cin, Cout_p), lambda n, i: (0, 0)),
            pl.BlockSpec((1, Cout_p), lambda n, i: (0, 0)),
        ],
        out_specs=pl.BlockSpec((1, sh, W, Cout_p), lambda n, i: (n, i, 0, 0)),
        compiler_params=pltpu.CompilerParams(
            dimension_semantics=("parallel", "parallel"),
            vmem_limit_bytes=int(vmem_limit)),
    )(x, x, x, prep["w1"], prep["b1"], prep["w2"], prep["b2"],
      prep["w3"], prep["wd"], prep["b3"])

    if trim_padding and Cout_p != Cout:
        out = out[..., :Cout]   # consumers that accept the padded layout can skip this
    return out


def osblock_reference(x, p):
    """Pure-JAX f32 reference (NHWC, inference-mode BN) for correctness."""
    def conv1x1(h, w):
        return jnp.einsum("nhwc,cd->nhwd", h, w)

    def conv3x3(h, w):  # w: [3, 3, Cin, Cout]
        return lax.conv_general_dilated(
            h, w, window_strides=(1, 1), padding="SAME",
            dimension_numbers=("NHWC", "HWIO", "NHWC"))

    x1 = jnp.maximum(conv1x1(x, p["w1"]) * p["bn1_s"] + p["bn1_b"], 0.0)
    T = p["w2"].shape[0]
    x2 = jnp.zeros_like(x1)
    for t in range(T):
        b = jnp.maximum(conv3x3(x1, p["w2"][t]) * p["bn2_s"][t] + p["bn2_b"][t], 0.0)
        x2 = x2 + b
    x2 = x2 / float(T)
    x3 = conv1x1(x2, p["w3"]) * p["bn3_s"] + p["bn3_b"]
    ident = conv1x1(x, p["wd"]) * p["bnd_s"] + p["bnd_b"]
    return jnp.maximum(x3 + ident, 0.0)


def make_params(key, in_channels, out_channels, reduction, T):
    mid = out_channels // reduction
    eps = 1e-5
    keys = jax.random.split(key, 16)

    def bn(kg, kb, c):
        gamma = 1.0 + 0.1 * jax.random.normal(kg, (c,), jnp.float32)
        beta = 0.1 * jax.random.normal(kb, (c,), jnp.float32)
        running_mean = jnp.zeros((c,), jnp.float32)
        running_var = jnp.ones((c,), jnp.float32)
        scale = gamma / jnp.sqrt(running_var + eps)
        shift = beta - running_mean * scale
        return scale.reshape(1, c), shift.reshape(1, c)

    p = {}
    p["w1"] = 0.1 * jax.random.normal(keys[0], (in_channels, mid), jnp.float32)
    p["bn1_s"], p["bn1_b"] = bn(keys[1], keys[2], mid)

    p["w2"] = 0.1 * jax.random.normal(keys[3], (T, 3, 3, mid, mid), jnp.float32)
    s2, b2 = [], []
    for t in range(T):
        kg, kb = jax.random.split(keys[4 + t])
        s, b = bn(kg, kb, mid)
        s2.append(s)
        b2.append(b)
    p["bn2_s"] = jnp.stack(s2)   # [T, 1, mid]
    p["bn2_b"] = jnp.stack(b2)   # [T, 1, mid]

    p["w3"] = 0.1 * jax.random.normal(keys[9], (mid, out_channels), jnp.float32)
    p["bn3_s"], p["bn3_b"] = bn(keys[10], keys[11], out_channels)

    p["wd"] = 0.1 * jax.random.normal(keys[12], (in_channels, out_channels), jnp.float32)
    p["bnd_s"], p["bnd_b"] = bn(keys[13], keys[14], out_channels)
    return p


if __name__ == "__main__":
    N, H, W = 2, 16, 16
    in_channels, out_channels, reduction, T = 4, 8, 4, 4

    key = jax.random.PRNGKey(0)
    kx, kp = jax.random.split(key)
    x = jax.random.normal(kx, (N, H, W, in_channels), jnp.float32)  # NHWC
    params = make_params(kp, in_channels, out_channels, reduction, T)

    # Weight folding / im2col packing happens ONCE here; the prepared tensors
    # are closed over by the jitted forward (hoisted out of the per-call path).
    prep = prepare_osblock_params(params)
    fwd = jax.jit(lambda inp: osblock_pallas(inp, prep, strip_rows=8))

    out = jax.block_until_ready(fwd(x))
    ref = jax.block_until_ready(osblock_reference(x, params))

    assert out.shape == (N, H, W, out_channels), out.shape
    out_f32 = out.astype(jnp.float32)
    # Matmuls use bf16 operands (f32 accumulation) and the output is stored
    # in bf16, compared against an all-f32 reference.
    assert jnp.allclose(out_f32, ref, atol=2e-2, rtol=2e-2), (
        float(jnp.max(jnp.abs(out_f32 - ref))))
    print("KERNEL_OK")
</pallas_src>

<mosaic_0001>
module attributes {stable_mosaic.version = 11 : i64} {
  func.func @osblock_kernel(%arg0: i32, %arg1: i32, %arg2: memref<1x8x16x4xf32, #tpu.memory_space<vmem>>, %arg3: memref<1x1x16x4xf32, #tpu.memory_space<vmem>>, %arg4: memref<1x1x16x4xf32, #tpu.memory_space<vmem>>, %arg5: memref<4x2xbf16, #tpu.memory_space<vmem>>, %arg6: memref<1x2xf32, #tpu.memory_space<vmem>>, %arg7: memref<18x8xbf16, #tpu.memory_space<vmem>>, %arg8: memref<1x8xf32, #tpu.memory_space<vmem>>, %arg9: memref<2x8xbf16, #tpu.memory_space<vmem>>, %arg10: memref<4x8xbf16, #tpu.memory_space<vmem>>, %arg11: memref<1x8xf32, #tpu.memory_space<vmem>>, %arg12: memref<1x8x16x8xbf16, #tpu.memory_space<vmem>>) attributes {dimension_semantics = [#tpu.dimension_semantics<parallel>, #tpu.dimension_semantics<parallel>], iteration_bounds = array<i64: 2, 2>, scalar_prefetch = 0 : i64, scratch_operands = 0 : i64, tpu.core_type = #tpu.core_type<tc>, window_params = [{transform_indices = @transform_0, window_bounds = array<i64: 1, 8, 16, 4>}, {transform_indices = @transform_1, window_bounds = array<i64: 1, 1, 16, 4>}, {transform_indices = @transform_2, window_bounds = array<i64: 1, 1, 16, 4>}, {pipeline_mode = #tpu.pipeline_mode<synchronous>, transform_indices = @transform_3, window_bounds = array<i64: 4, 2>}, {pipeline_mode = #tpu.pipeline_mode<synchronous>, transform_indices = @transform_4, window_bounds = array<i64: 1, 2>}, {pipeline_mode = #tpu.pipeline_mode<synchronous>, transform_indices = @transform_5, window_bounds = array<i64: 18, 8>}, {pipeline_mode = #tpu.pipeline_mode<synchronous>, transform_indices = @transform_6, window_bounds = array<i64: 1, 8>}, {pipeline_mode = #tpu.pipeline_mode<synchronous>, transform_indices = @transform_7, window_bounds = array<i64: 2, 8>}, {pipeline_mode = #tpu.pipeline_mode<synchronous>, transform_indices = @transform_8, window_bounds = array<i64: 4, 8>}, {pipeline_mode = #tpu.pipeline_mode<synchronous>, transform_indices = @transform_9, window_bounds = array<i64: 1, 8>}, {transform_indices = @transform_10, window_bounds = array<i64: 1, 8, 16, 8>}]} {
    %c0 = arith.constant 0 : index
    %c0_0 = arith.constant 0 : index
    %c0_1 = arith.constant 0 : index
    %c0_2 = arith.constant 0 : index
    %0 = vector.load %arg3[%c0, %c0_0, %c0_1, %c0_2] : memref<1x1x16x4xf32, #tpu.memory_space<vmem>>, vector<1x1x16x4xf32>
    %1 = vector.shape_cast %0 : vector<1x1x16x4xf32> to vector<16x4xf32>
    %c0_3 = arith.constant 0 : index
    %c0_4 = arith.constant 0 : index
    %c0_5 = arith.constant 0 : index
    %c0_6 = arith.constant 0 : index
    %2 = vector.load %arg2[%c0_3, %c0_4, %c0_5, %c0_6] : memref<1x8x16x4xf32, #tpu.memory_space<vmem>>, vector<1x8x16x4xf32>
    %3 = vector.shape_cast %2 : vector<1x8x16x4xf32> to vector<128x4xf32>
    %c0_7 = arith.constant 0 : index
    %c0_8 = arith.constant 0 : index
    %c0_9 = arith.constant 0 : index
    %c0_10 = arith.constant 0 : index
    %4 = vector.load %arg4[%c0_7, %c0_8, %c0_9, %c0_10] : memref<1x1x16x4xf32, #tpu.memory_space<vmem>>, vector<1x1x16x4xf32>
    %5 = vector.shape_cast %4 : vector<1x1x16x4xf32> to vector<16x4xf32>
    %6 = tpu.concatenate %1, %3, %5 in 0 : vector<16x4xf32>, vector<128x4xf32>, vector<16x4xf32> -> vector<160x4xf32>
    %7 = arith.truncf %6 : vector<160x4xf32> to vector<160x4xbf16>
    %c0_11 = arith.constant 0 : index
    %c0_12 = arith.constant 0 : index
    %8 = vector.load %arg5[%c0_11, %c0_12] : memref<4x2xbf16, #tpu.memory_space<vmem>>, vector<4x2xbf16>
    %cst = arith.constant dense<0.000000e+00> : vector<160x2xf32>
    %9 = tpu.matmul %7, %8, %cst {dimension_numbers = #tpu.dot_dimension_numbers<[1], [0], [0], [1], [0, 0, 1, 1], [], []>} : vector<160x4xbf16>, vector<4x2xbf16>, vector<160x2xf32> -> vector<160x2xf32>
    %c0_13 = arith.constant 0 : index
    %c0_14 = arith.constant 0 : index
    %10 = vector.load %arg6[%c0_13, %c0_14] : memref<1x2xf32, #tpu.memory_space<vmem>>, vector<1x2xf32>
    %11 = vector.broadcast %10 : vector<1x2xf32> to vector<160x2xf32>
    %12 = arith.addf %9, %11 : vector<160x2xf32>
    %cst_15 = arith.constant 0.000000e+00 : f32
    %13 = vector.broadcast %cst_15 : f32 to vector<160x2xf32>
    %14 = arith.maximumf %12, %13 : vector<160x2xf32>
    %15 = tpu.iota {dimensions = array<i32: 0>} : vector<160x1xi32>
    %c16_i32 = arith.constant 16 : i32
    %16 = vector.broadcast %c16_i32 : i32 to vector<160x1xi32>
    %17 = arith.cmpi slt, %15, %16 : vector<160x1xi32>
    %c0_i32 = arith.constant 0 : i32
    %18 = arith.cmpi eq, %arg1, %c0_i32 : i32
    %19 = vector.broadcast %18 : i1 to vector<160x1xi1>
    %20 = arith.andi %17, %19 : vector<160x1xi1>
    %c144_i32 = arith.constant 144 : i32
    %21 = vector.broadcast %c144_i32 : i32 to vector<160x1xi32>
    %22 = arith.cmpi sge, %15, %21 : vector<160x1xi32>
    %c1_i32 = arith.constant 1 : i32
    %23 = arith.cmpi eq, %arg1, %c1_i32 : i32
    %24 = vector.broadcast %23 : i1 to vector<160x1xi1>
    %25 = arith.andi %22, %24 : vector<160x1xi1>
    %26 = arith.ori %20, %25 : vector<160x1xi1>
    %cst_16 = arith.constant 0.000000e+00 : f32
    %27 = vector.shape_cast %26 : vector<160x1xi1> to vector<160x1xi1>
    %28 = vector.broadcast %27 : vector<160x1xi1> to vector<160x2xi1>
    %29 = vector.broadcast %cst_16 : f32 to vector<160x2xf32>
    %30 = arith.select %28, %29, %14 : vector<160x2xi1>, vector<160x2xf32>
    %31 = arith.truncf %30 : vector<160x2xf32> to vector<160x2xbf16>
    %cst_17 = arith.constant 0.000000e+00 : bf16
    %32 = vector.broadcast %cst_17 : bf16 to vector<1x2xbf16>
    %33 = tpu.concatenate %32, %31, %32 in 0 : vector<1x2xbf16>, vector<160x2xbf16>, vector<1x2xbf16> -> vector<162x2xbf16>
    %34 = tpu.iota {dimensions = array<i32: 0>} : vector<128x1xi32>
    %c16_i32_18 = arith.constant 16 : i32
    %c0_i32_19 = arith.constant 0 : i32
    %35 = arith.cmpi eq, %c16_i32_18, %c0_i32_19 : i32
    %c1_i32_20 = arith.constant 1 : i32
    %36 = arith.select %35, %c1_i32_20, %c16_i32_18 : i32
    %37 = vector.broadcast %36 : i32 to vector<128x1xi32>
    %38 = arith.remsi %34, %37 : vector<128x1xi32>
    %c0_i32_21 = arith.constant 0 : i32
    %39 = vector.broadcast %c0_i32_21 : i32 to vector<128x1xi32>
    %40 = arith.cmpi ne, %38, %39 : vector<128x1xi32>
    %c0_i32_22 = arith.constant 0 : i32
    %41 = vector.broadcast %c0_i32_22 : i32 to vector<128x1xi32>
    %42 = arith.cmpi slt, %38, %41 : vector<128x1xi32>
    %c0_i32_23 = arith.constant 0 : i32
    %43 = arith.cmpi slt, %36, %c0_i32_23 : i32
    %44 = vector.broadcast %43 : i1 to vector<128x1xi1>
    %45 = vector.broadcast %44 : vector<128x1xi1> to vector<128x1xi1>
    %46 = arith.xori %42, %45 : vector<128x1xi1>
    %47 = arith.andi %46, %40 : vector<128x1xi1>
    %48 = vector.broadcast %36 : i32 to vector<128x1xi32>
    %49 = arith.addi %38, %48 : vector<128x1xi32>
    %50 = arith.select %47, %49, %38 : vector<128x1xi1>, vector<128x1xi32>
    %c0_i32_24 = arith.constant 0 : i32
    %51 = vector.broadcast %c0_i32_24 : i32 to vector<128x1xi32>
    %52 = arith.cmpi sgt, %50, %51 : vector<128x1xi32>
    %c15_i32 = arith.constant 15 : i32
    %53 = vector.broadcast %c15_i32 : i32 to vector<128x1xi32>
    %54 = arith.cmpi slt, %50, %53 : vector<128x1xi32>
    %55 = vector.extract_strided_slice %33 {offsets = [0, 0], sizes = [128, 2], strides = [1, 1]} : vector<162x2xbf16> to vector<128x2xbf16>
    %cst_25 = arith.constant 0.000000e+00 : f32
    %56 = arith.truncf %cst_25 : f32 to bf16
    %57 = vector.shape_cast %52 : vector<128x1xi1> to vector<128x1xi1>
    %58 = vector.broadcast %57 : vector<128x1xi1> to vector<128x2xi1>
    %59 = vector.broadcast %56 : bf16 to vector<128x2xbf16>
    %60 = arith.select %58, %55, %59 : vector<128x2xi1>, vector<128x2xbf16>
    %61 = vector.extract_strided_slice %33 {offsets = [1, 0], sizes = [128, 2], strides = [1, 1]} : vector<162x2xbf16> to vector<128x2xbf16>
    %62 = vector.extract_strided_slice %33 {offsets = [2, 0], sizes = [128, 2], strides = [1, 1]} : vector<162x2xbf16> to vector<128x2xbf16>
    %cst_26 = arith.constant 0.000000e+00 : f32
    %63 = arith.truncf %cst_26 : f32 to bf16
    %64 = vector.shape_cast %54 : vector<128x1xi1> to vector<128x1xi1>
    %65 = vector.broadcast %64 : vector<128x1xi1> to vector<128x2xi1>
    %66 = vector.broadcast %63 : bf16 to vector<128x2xbf16>
    %67 = arith.select %65, %62, %66 : vector<128x2xi1>, vector<128x2xbf16>
    %68 = vector.extract_strided_slice %33 {offsets = [16, 0], sizes = [128, 2], strides = [1, 1]} : vector<162x2xbf16> to vector<128x2xbf16>
    %cst_27 = arith.constant 0.000000e+00 : f32
    %69 = arith.truncf %cst_27 : f32 to bf16
    %70 = vector.shape_cast %52 : vector<128x1xi1> to vector<128x1xi1>
    %71 = vector.broadcast %70 : vector<128x1xi1> to vector<128x2xi1>
    %72 = vector.broadcast %69 : bf16 to vector<128x2xbf16>
    %73 = arith.select %71, %68, %72 : vector<128x2xi1>, vector<128x2xbf16>
    %74 = vector.extract_strided_slice %33 {offsets = [17, 0], sizes = [128, 2], strides = [1, 1]} : vector<162x2xbf16> to vector<128x2xbf16>
    %75 = vector.extract_strided_slice %33 {offsets = [18, 0], sizes = [128, 2], strides = [1, 1]} : vector<162x2xbf16> to vector<128x2xbf16>
    %cst_28 = arith.constant 0.000000e+00 : f32
    %76 = arith.truncf %cst_28 : f32 to bf16
    %77 = vector.shape_cast %54 : vector<128x1xi1> to vector<128x1xi1>
    %78 = vector.broadcast %77 : vector<128x1xi1> to vector<128x2xi1>
    %79 = vector.broadcast %76 : bf16 to vector<128x2xbf16>
    %80 = arith.select %78, %75, %79 : vector<128x2xi1>, vector<128x2xbf16>
    %81 = vector.extract_strided_slice %33 {offsets = [32, 0], sizes = [128, 2], strides = [1, 1]} : vector<162x2xbf16> to vector<128x2xbf16>
    %cst_29 = arith.constant 0.000000e+00 : f32
    %82 = arith.truncf %cst_29 : f32 to bf16
    %83 = vector.shape_cast %52 : vector<128x1xi1> to vector<128x1xi1>
    %84 = vector.broadcast %83 : vector<128x1xi1> to vector<128x2xi1>
    %85 = vector.broadcast %82 : bf16 to vector<128x2xbf16>
    %86 = arith.select %84, %81, %85 : vector<128x2xi1>, vector<128x2xbf16>
    %87 = vector.extract_strided_slice %33 {offsets = [33, 0], sizes = [128, 2], strides = [1, 1]} : vector<162x2xbf16> to vector<128x2xbf16>
    %88 = vector.extract_strided_slice %33 {offsets = [34, 0], sizes = [128, 2], strides = [1, 1]} : vector<162x2xbf16> to vector<128x2xbf16>
    %cst_30 = arith.constant 0.000000e+00 : f32
    %89 = arith.truncf %cst_30 : f32 to bf16
    %90 = vector.shape_cast %54 : vector<128x1xi1> to vector<128x1xi1>
    %91 = vector.broadcast %90 : vector<128x1xi1> to vector<128x2xi1>
    %92 = vector.broadcast %89 : bf16 to vector<128x2xbf16>
    %93 = arith.select %91, %88, %92 : vector<128x2xi1>, vector<128x2xbf16>
    %94 = tpu.concatenate %60, %61, %67, %73, %74, %80, %86, %87, %93 in 1 : vector<128x2xbf16>, vector<128x2xbf16>, vector<128x2xbf16>, vector<128x2xbf16>, vector<128x2xbf16>, vector<128x2xbf16>, vector<128x2xbf16>, vector<128x2xbf16>, vector<128x2xbf16> -> vector<128x18xbf16>
    %c0_31 = arith.constant 0 : index
    %c0_32 = arith.constant 0 : index
    %95 = vector.load %arg7[%c0_31, %c0_32] : memref<18x8xbf16, #tpu.memory_space<vmem>>, vector<18x8xbf16>
    %cst_33 = arith.constant dense<0.000000e+00> : vector<128x8xf32>
    %96 = tpu.matmul %94, %95, %cst_33 {dimension_numbers = #tpu.dot_dimension_numbers<[1], [0], [0], [1], [0, 0, 1, 1], [], []>} : vector<128x18xbf16>, vector<18x8xbf16>, vector<128x8xf32> -> vector<128x8xf32>
    %c0_34 = arith.constant 0 : index
    %c0_35 = arith.constant 0 : index
    %97 = vector.load %arg8[%c0_34, %c0_35] : memref<1x8xf32, #tpu.memory_space<vmem>>, vector<1x8xf32>
    %98 = vector.broadcast %97 : vector<1x8xf32> to vector<128x8xf32>
    %99 = arith.addf %96, %98 : vector<128x8xf32>
    %cst_36 = arith.constant 0.000000e+00 : f32
    %100 = vector.broadcast %cst_36 : f32 to vector<128x8xf32>
    %101 = arith.maximumf %99, %100 : vector<128x8xf32>
    %102 = vector.extract_strided_slice %101 {offsets = [0, 0], sizes = [128, 2], strides = [1, 1]} : vector<128x8xf32> to vector<128x2xf32>
    %103 = vector.extract_strided_slice %101 {offsets = [0, 2], sizes = [128, 2], strides = [1, 1]} : vector<128x8xf32> to vector<128x2xf32>
    %104 = arith.addf %102, %103 : vector<128x2xf32>
    %105 = vector.extract_strided_slice %101 {offsets = [0, 4], sizes = [128, 2], strides = [1, 1]} : vector<128x8xf32> to vector<128x2xf32>
    %106 = arith.addf %104, %105 : vector<128x2xf32>
    %107 = vector.extract_strided_slice %101 {offsets = [0, 6], sizes = [128, 2], strides = [1, 1]} : vector<128x8xf32> to vector<128x2xf32>
    %108 = arith.addf %106, %107 : vector<128x2xf32>
    %109 = vector.extract_strided_slice %7 {offsets = [16, 0], sizes = [128, 4], strides = [1, 1]} : vector<160x4xbf16> to vector<128x4xbf16>
    %110 = arith.truncf %108 : vector<128x2xf32> to vector<128x2xbf16>
    %c0_37 = arith.constant 0 : index
    %c0_38 = arith.constant 0 : index
    %111 = vector.load %arg9[%c0_37, %c0_38] : memref<2x8xbf16, #tpu.memory_space<vmem>>, vector<2x8xbf16>
    %cst_39 = arith.constant dense<0.000000e+00> : vector<128x8xf32>
    %112 = tpu.matmul %110, %111, %cst_39 {dimension_numbers = #tpu.dot_dimension_numbers<[1], [0], [0], [1], [0, 0, 1, 1], [], []>} : vector<128x2xbf16>, vector<2x8xbf16>, vector<128x8xf32> -> vector<128x8xf32>
    %c0_40 = arith.constant 0 : index
    %c0_41 = arith.constant 0 : index
    %113 = vector.load %arg10[%c0_40, %c0_41] : memref<4x8xbf16, #tpu.memory_space<vmem>>, vector<4x8xbf16>
    %cst_42 = arith.constant dense<0.000000e+00> : vector<128x8xf32>
    %114 = tpu.matmul %109, %113, %cst_42 {dimension_numbers = #tpu.dot_dimension_numbers<[1], [0], [0], [1], [0, 0, 1, 1], [], []>} : vector<128x4xbf16>, vector<4x8xbf16>, vector<128x8xf32> -> vector<128x8xf32>
    %115 = arith.addf %112, %114 : vector<128x8xf32>
    %c0_43 = arith.constant 0 : index
    %c0_44 = arith.constant 0 : index
    %116 = vector.load %arg11[%c0_43, %c0_44] : memref<1x8xf32, #tpu.memory_space<vmem>>, vector<1x8xf32>
    %117 = vector.broadcast %116 : vector<1x8xf32> to vector<128x8xf32>
    %118 = arith.addf %115, %117 : vector<128x8xf32>
    %cst_45 = arith.constant 0.000000e+00 : f32
    %119 = vector.broadcast %cst_45 : f32 to vector<128x8xf32>
    %120 = arith.maximumf %118, %119 : vector<128x8xf32>
    %121 = vector.shape_cast %120 : vector<128x8xf32> to vector<1x8x16x8xf32>
    %122 = arith.truncf %121 : vector<1x8x16x8xf32> to vector<1x8x16x8xbf16>
    %c0_46 = arith.constant 0 : index
    %c0_47 = arith.constant 0 : index
    %c0_48 = arith.constant 0 : index
    %c0_49 = arith.constant 0 : index
    %123 = vector.load %arg12[%c0_46, %c0_47, %c0_48, %c0_49] : memref<1x8x16x8xbf16, #tpu.memory_space<vmem>>, vector<1x8x16x8xbf16>
    tpu.vector_store %arg12[%c0_46, %c0_47, %c0_48, %c0_49], %122 {strides = array<i32>} : memref<1x8x16x8xbf16, #tpu.memory_space<vmem>>, vector<1x8x16x8xbf16>,
    return
  }
  func.func @transform_0(%arg0: i32, %arg1: i32) -> (i32, i32, i32, i32) {
    %c0_i32 = arith.constant 0 : i32
    %c0_i32_0 = arith.constant 0 : i32
    %c0_i32_1 = arith.constant 0 : i32
    return %arg0, %arg1, %c0_i32, %c0_i32_0 : i32, i32, i32, i32
  }
  func.func @transform_1(%arg0: i32, %arg1: i32) -> (i32, i32, i32, i32) {
    %c8_i32 = arith.constant 8 : i32
    %0 = arith.muli %arg1, %c8_i32 : i32
    %c1_i32 = arith.constant 1 : i32
    %1 = arith.subi %0, %c1_i32 : i32
    %c0_i32 = arith.constant 0 : i32
    %2 = arith.maxsi %1, %c0_i32 : i32
    %c0_i32_0 = arith.constant 0 : i32
    %c0_i32_1 = arith.constant 0 : i32
    %c0_i32_2 = arith.constant 0 : i32
    return %arg0, %2, %c0_i32_0, %c0_i32_1 : i32, i32, i32, i32
  }
  func.func @transform_2(%arg0: i32, %arg1: i32) -> (i32, i32, i32, i32) {
    %c8_i32 = arith.constant 8 : i32
    %0 = arith.muli %arg1, %c8_i32 : i32
    %c8_i32_0 = arith.constant 8 : i32
    %1 = arith.addi %0, %c8_i32_0 : i32
    %c15_i32 = arith.constant 15 : i32
    %2 = arith.minsi %1, %c15_i32 : i32
    %c0_i32 = arith.constant 0 : i32
    %c0_i32_1 = arith.constant 0 : i32
    %c0_i32_2 = arith.constant 0 : i32
    return %arg0, %2, %c0_i32, %c0_i32_1 : i32, i32, i32, i32
  }
  func.func @transform_3(%arg0: i32, %arg1: i32) -> (i32, i32) {
    %c0_i32 = arith.constant 0 : i32
    %c0_i32_0 = arith.constant 0 : i32
    %c0_i32_1 = arith.constant 0 : i32
    return %c0_i32, %c0_i32_0 : i32, i32
  }
  func.func @transform_4(%arg0: i32, %arg1: i32) -> (i32, i32) {
    %c0_i32 = arith.constant 0 : i32
    %c0_i32_0 = arith.constant 0 : i32
    %c0_i32_1 = arith.constant 0 : i32
    return %c0_i32, %c0_i32_0 : i32, i32
  }
  func.func @transform_5(%arg0: i32, %arg1: i32) -> (i32, i32) {
    %c0_i32 = arith.constant 0 : i32
    %c0_i32_0 = arith.constant 0 : i32
    %c0_i32_1 = arith.constant 0 : i32
    return %c0_i32, %c0_i32_0 : i32, i32
  }
  func.func @transform_6(%arg0: i32, %arg1: i32) -> (i32, i32) {
    %c0_i32 = arith.constant 0 : i32
    %c0_i32_0 = arith.constant 0 : i32
    %c0_i32_1 = arith.constant 0 : i32
    return %c0_i32, %c0_i32_0 : i32, i32
  }
  func.func @transform_7(%arg0: i32, %arg1: i32) -> (i32, i32) {
    %c0_i32 = arith.constant 0 : i32
    %c0_i32_0 = arith.constant 0 : i32
    %c0_i32_1 = arith.constant 0 : i32
    return %c0_i32, %c0_i32_0 : i32, i32
  }
  func.func @transform_8(%arg0: i32, %arg1: i32) -> (i32, i32) {
    %c0_i32 = arith.constant 0 : i32
    %c0_i32_0 = arith.constant 0 : i32
    %c0_i32_1 = arith.constant 0 : i32
    return %c0_i32, %c0_i32_0 : i32, i32
  }
  func.func @transform_9(%arg0: i32, %arg1: i32) -> (i32, i32) {
    %c0_i32 = arith.constant 0 : i32
    %c0_i32_0 = arith.constant 0 : i32
    %c0_i32_1 = arith.constant 0 : i32
    return %c0_i32, %c0_i32_0 : i32, i32
  }
  func.func @transform_10(%arg0: i32, %arg1: i32) -> (i32, i32, i32, i32) {
    %c0_i32 = arith.constant 0 : i32
    %c0_i32_0 = arith.constant 0 : i32
    %c0_i32_1 = arith.constant 0 : i32
    return %arg0, %arg1, %c0_i32, %c0_i32_0 : i32, i32, i32, i32
  }
}

</mosaic_0001>

<bundles_post_ra>
// kernel: _lambda_.1
= control target key start
LH: loop header
LB: loop body
LE: loop exit
PB: predicated region body
PF: predicated region fallthrough
CT: control target
= control target key end

     0   :  { %s3048_s13 = smov 0   ;;  %s3050_s14 = smov 0   ;;  %s4365_s0 = inlined_call_operand.vmem [shape: f32[2,16,16,4], index: 0, kind: input, shape index: {}, may-alias: {0,1,2}]   ;;  %s4366_s1 = inlined_call_operand.vmem [shape: f32[2,16,16,4], index: 1, kind: input, shape index: {}, may-alias: {0,1,2}]   ;;  %s4367_s2 = inlined_call_operand.vmem [shape: f32[2,16,16,4], index: 2, kind: input, shape index: {}, may-alias: {0,1,2}]   ;;  %s4368_s3 = inlined_call_operand.vmem [shape: bf16[4,2], index: 3, kind: input, shape index: {}]   ;;  %s4369_s4 = inlined_call_operand.vmem [shape: f32[1,2], index: 4, kind: input, shape index: {}]   ;;  %s4370_s5 = inlined_call_operand.vmem [shape: bf16[18,8], index: 5, kind: input, shape index: {}]   ;;  %s4371_s6 = inlined_call_operand.vmem [shape: f32[1,8], index: 6, kind: input, shape index: {}]   ;;  %s4372_s7 = inlined_call_operand.vmem [shape: bf16[2,8], index: 7, kind: input, shape index: {}]   ;;  %s4373_s8 = inlined_call_operand.vmem [shape: bf16[4,8], index: 8, kind: input, shape index: {}]   ;;  %s4374_s9 = inlined_call_operand.vmem [shape: f32[1,8], index: 9, kind: input, shape index: {}]   ;;  %s4375_s10 = inlined_call_operand.vmem [shape: bf16[2,16,16,8], index: 10, kind: output, shape index: {}]  }
   0x1   :  { %4385 = sst [smem:[#allocation2_spill]] %s4368_s3  ;;  %s3052_s15 = smov 0  }
   0x2   :  { %s3054_s16 = smov 0   ;;  %s3056_s17 = smov 0  }
   0x3 LB: > { %s29_s18 = sadd.s32 1, %s2970_s15  ;;  %s32_s19 = sadd.s32 1, %s2974_s16  ;;  %s2978_s17 = sphi %s3056_s17, %s20_s17   ;;  %s2974_s16 = sphi %s3054_s16, %s4519_s16   ;;  %s2970_s15 = sphi %s3052_s15, %s4518_s15   ;;  %s2966_s14 = sphi %s3050_s14, %s4517_s14   ;;  %s2962_s13 = sphi %s3048_s13, %s4516_s13  }
   0x4   : > { %p30_p0 = scmp.ge.s32.totalorder %s29_s18, 2  ;;  %p2798_p1 = scmp.ge.s32.totalorder %s2978_s17, 1 }
   0x5   : > { %p398_p2 = scmp.lt.s32.totalorder %s2978_s17, 5 }
   0x6   : > { %s4521_s18 = smov (%p30_p0, %s29_s18), 0  ;;  %s4523_s19 = smov (!%p30_p0, %s32_s19), %s2974_s16 }
   0x7   : > { %p399_p3 = pnand %p2798_p1, %p398_p2  ;;  %p34_p4 = scmp.ge.s32.totalorder %s4523_s19, 2 }
   0x8   : > { %s4386_s3 = sld [smem:[#allocation2_spill]] (!%p399_p3)  ;;  %s2799_s22 = sshll.u32 (!%p399_p3), %s2962_s13, 3 }
   0x9   : > { %s4525_s19 = smov (%p34_p4, %s4523_s19), 0  ;;  %402 = sbr.rel (%p399_p3) target bundleno = 899 (0x383), region = 60 }
   0xa   : > { %p473_p5 = scmp.lt.s32.totalorder (!%p399_p3), %s2966_s14, 1  ;;  %s2804_s23 = sadd.s32 (!%p399_p3), 4294967295, %s2799_s22 }
   0xb   : > { %p475_p6 = scmp.lt.s32.totalorder (!%p399_p3), %s2799_s22, 15  ;;  %p485_p7 = scmp.gt.s32.totalorder (!%p399_p3), %s2804_s23, 0 }
   0xc   : > { %p2805_p8 = scmp.lt.s32.totalorder (!%p399_p3), %s2804_s23, 15  ;;  %s501_s24 = sadd.s32 (!%p399_p3), 8, %s2799_s22 }
   0xd   : > { %p3087_p9 = scmp.lt.s32.totalorder (!%p399_p3), %s501_s24, 15  ;;  %p781_p10 = scmp.eq.s32.totalorder (!%p399_p3), %s2962_s13, 0 }
   0xe   : > { %v571_v0 = vld [vmem:[%s4386_s3] sm:$0x3]  ;;  %vm4376_vm0 = vcmask 1041408   ;;  %s4527_s14 = smov (!%p473_p5, %s2966_s14), 1  ;;  %s4529_s22 = smov (!%p475_p6, %s2799_s22), 15  ;;  %vm4377_vm1 = vcmask 31744  }
   0xf   : > { %v659_v1 = vsel %vm4376_vm0, %v571_v0, 0  ;;  %s4531_s23 = smov (!%p485_p7, %s2804_s23), 0  ;;  %s3085_s25 = sshll.u32 %s4527_s14, 5  ;;  %vm2980_vm7 = vmmov 1   ;;  %vm4380_vm11 = vsmask.f32 256 }
  0x10   : > { %668 = vmatpush.bf16.msra.mxu0 %v659_v1  ;;  %2883 = vmatpush.bf16.msra.mxu2 %v659_v1  ;;  %s4533_s23 = smov (!%p2805_p8, %s4531_s23), 15  ;;  %s4535_s24 = smov (!%p3087_p9, %s501_s24), 15  ;;  %vm1351_vm8 = vmpackc.low %vm2980_vm7, %vm2980_vm7  ;;  %vm4379_vm12 = vcmask 1040384  }
  0x11   : > { %s2800_s27 = sshll.u32 %s4529_s22, 1  ;;  %s2810_s28 = sshll.u32 %s4533_s23, 1 }
  0x12   : > { %s493_s29 = sadd.s32 %s2810_s28, %s3085_s25  ;;  %s3095_s11 = sadd.s32 %s3085_s25, %s2800_s27 }
  0x13   : > { %s2812_s30 = sshll.u32 %s493_s29, 3  ;;  %s4537_s24 = smov (!%p3087_p9, %s4535_s24), 15 }
  0x14   : > { %s495_s20 = scalar_lea.vmem %s4366_s1, %s2812_s30  ;;  %s2802_s21 = sshll.u32 %s3095_s11, 3 }
  0x15   : > { %v531_v2 = vld [vmem:[%s495_s20] sm:$0xff]  ;;  %v532_v3 = vld [vmem:[%s495_s20 + $0x8] sm:$0xff]  ;;  %s3103_s3 = sshll.u32 %s4537_s24, 1  ;;  %s3110_s28 = scalar_lea.vmem %s4365_s0, %s2802_s21 }
  0x16   : > { %v551_v4 = vpack.c.bf16 %v531_v2, %v531_v2  ;;  %v552_v5 = vpack.c.bf16 %v532_v3, %v532_v3  ;;  %s510_s22 = sadd.s32 %s3103_s3, %s3085_s25  ;;  %v533_v9 = vld [vmem:[%s3110_s28] sm:$0xff]  ;;  %v534_v10 = vld [vmem:[%s3110_s28 + $0x8] sm:$0xff]  ;;  %v535_v16 = vld [vmem:[%s3110_s28 + $0x10] sm:$0xff]  ;;  %s2982_s14 = smov 6  }
  0x17   : > { %v553_v11 = vpack.c.bf16 %v533_v9, %v533_v9  ;;  %v554_v12 = vpack.c.bf16 %v534_v10, %v534_v10  ;;  %v536_v17 = vld [vmem:[%s3110_s28 + $0x18] sm:$0xff]  ;;  %v555_v18 = vpack.c.bf16 %v535_v16, %v535_v16  ;;  %v537_v23 = vld [vmem:[%s3110_s28 + $0x20] sm:$0xff]  ;;  %v538_v24 = vld [vmem:[%s3110_s28 + $0x28] sm:$0xff]  ;;  %s2819_s24 = sshll.u32 %s510_s22, 3  ;;  %s2983_s20 = smov 4  }
  0x18   : > { %v596_v6 = vunpack.c.l.b16 %v551_v4  ;;  %v597_v7 = vunpack.c.l.b16 %v552_v5  ;;  %v556_v19 = vpack.c.bf16 %v536_v17, %v536_v17  ;;  %v557_v25 = vpack.c.bf16 %v537_v23, %v537_v23  ;;  %v539_v30 = vld [vmem:[%s3110_s28 + $0x30] sm:$0xff]  ;;  %v540_v31 = vld [vmem:[%s3110_s28 + $0x38] sm:$0xff]  ;;  %v541_v37 = vld [vmem:[%s3110_s28 + $0x40] sm:$0xff]  ;;  %s512_s30 = scalar_lea.vmem %s4367_s2, %s2819_s24  ;;  %s2984_s21 = smov 2  }
  0x19   : > { %v598_v13 = vunpack.c.l.b16 %v553_v11  ;;  %v599_v14 = vunpack.c.l.b16 %v554_v12  ;;  %v600_v20 = vunpack.c.l.b16 %v555_v18  ;;  %v558_v26 = vpack.c.bf16 %v538_v24, %v538_v24  ;;  %v542_v38 = vld [vmem:[%s3110_s28 + $0x48] sm:$0xff]  ;;  %v549_v44 = vld [vmem:[%s512_s30] sm:$0xff]  ;;  %v543_v46 = vld [vmem:[%s3110_s28 + $0x50] sm:$0xff]  ;;  %s782_s12 = scalar_select %p781_p10, 1, 0 }
  0x1a   : > { %v616_v8 = vpack.c.b16 %v597_v7, %v596_v6  ;;  %v601_v21 = vunpack.c.l.b16 %v556_v19  ;;  %v602_v27 = vunpack.c.l.b16 %v557_v25  ;;  %v559_v32 = vpack.c.bf16 %v539_v30, %v539_v30  ;;  %v550_v45 = vld [vmem:[%s512_s30 + $0x8] sm:$0xff]  ;;  %v544_v47 = vld [vmem:[%s3110_s28 + $0x58] sm:$0xff]  ;;  %v545_v58 = vld [vmem:[%s3110_s28 + $0x60] sm:$0xff]  ;;  %s2985_s22 = smov 12   ;;  %s2986_s23 = smov 10  }
  0x1b   : > { %v3115_v15 = vpack.c.b16 %v599_v14, %v598_v13  ;;  %v603_v28 = vunpack.c.l.b16 %v558_v26  ;;  %v560_v33 = vpack.c.bf16 %v540_v31, %v540_v31  ;;  %v561_v39 = vpack.c.bf16 %v541_v37, %v541_v37  ;;  %v546_v59 = vld [vmem:[%s3110_s28 + $0x68] sm:$0xff]  ;;  %v547_v1 = vld [vmem:[%s3110_s28 + $0x70] sm:$0xff]  ;;  %v548_v2 = vld [vmem:[%s3110_s28 + $0x78] sm:$0xff]  ;;  %s2987_s27 = smov 8   ;;  %s2988_s28 = smov 16  }
  0x1c   : > { %2824 = vmatmul.msk.bf16.vlgmr.msra.gmra.mxu0 %vm4377_vm1, %v616_v8  ;;  %v3121_v22 = vpack.c.b16 %v601_v21, %v600_v20  ;;  %v604_v34 = vunpack.c.l.b16 %v559_v32  ;;  %v562_v40 = vpack.c.bf16 %v542_v38, %v542_v38  ;;  %v569_v48 = vpack.c.bf16 %v549_v44, %v549_v44  ;;  %v3170_v9 = vld [vmem:[%s4369_s4] ss:$0 sm:$0xff]  ;;  %s2989_s24 = smov 14   ;;  %p825_p11 = scmp.eq.s32.totalorder %s2962_s13, 1 }
  0x1d   : > { %v3127_v29 = vpack.c.b16 %v603_v28, %v602_v27  ;;  %v605_v35 = vunpack.c.l.b16 %v560_v33  ;;  %v606_v41 = vunpack.c.l.b16 %v561_v39  ;;  %v570_v49 = vpack.c.bf16 %v550_v45, %v550_v45  ;;  %s2823_s13 = sshll.u32 %s3095_s11, 2 }
  0x1e   : > { %v607_v42 = vunpack.c.l.b16 %v562_v40  ;;  %v614_v50 = vunpack.c.l.b16 %v569_v48  ;;  %v563_v52 = vpack.c.bf16 %v543_v46, %v543_v46  ;;  %v564_v53 = vpack.c.bf16 %v544_v47, %v544_v47  ;;  %s826_s26 = scalar_select %p825_p11, 1, 0 }
  0x1f   : > { %v3133_v36 = vpack.c.b16 %v605_v35, %v604_v34  ;;  %v615_v51 = vunpack.c.l.b16 %v570_v49  ;;  %v565_v60 = vpack.c.bf16 %v545_v58, %v545_v58  ;;  %v566_v61 = vpack.c.bf16 %v546_v59, %v546_v59  ;;  %s4301_s3 = scalar_lea.vmem %s4375_s10, %s2823_s13 }
  0x20   : > { %v3142_v43 = vpack.c.b16 %v607_v42, %v606_v41  ;;  %v608_v55 = vunpack.c.l.b16 %v563_v52  ;;  %v609_v56 = vunpack.c.l.b16 %v564_v53  ;;  %v567_v3 = vpack.c.bf16 %v547_v1, %v547_v1 }
  0x21   : > { %v625_v54 = vpack.c.b16 %v615_v51, %v614_v50  ;;  %v610_v62 = vunpack.c.l.b16 %v565_v60  ;;  %v611_v63 = vunpack.c.l.b16 %v566_v61  ;;  %v568_v4 = vpack.c.bf16 %v548_v2, %v548_v2 }
  0x22   : > { %v3152_v57 = vpack.c.b16 %v609_v56, %v608_v55  ;;  %v740_v5 = vlaneseq  ;;  %v612_v6 = vunpack.c.l.b16 %v567_v3  ;;  %v783_v17 = vstv %s782_s12 }
  0x23   : > { %2833 = vmatmul.msk.bf16.vlgmr.msra.gmra.mxu2 %vm4377_vm1, %v625_v54  ;;  %v3158_v0 = vpack.c.b16 %v611_v63, %v610_v62  ;;  %v613_v7 = vunpack.c.l.b16 %v568_v4  ;;  %vm3180_vm3 = vcmp.eq.s32.totalorder %v783_v17, 1  ;;  %v2981_v28 = vmov 0  }
  0x24   : > { %v3165_v8 = vshrl.u32 %v740_v5, 7  ;;  %v1367_v33 = vsel %vm1351_vm8, 65537, %v2981_v28  ;;  %v3213_v50 = vunpack.c.l.b16 %v2981_v28  ;;  %v3216_v51 = vunpack.c.h.b16 %v2981_v28 }
  0x25   : > { %v3172_v10 = vpack.c.b16 %v613_v7, %v612_v6  ;;  %v3208_v41 = vunpack.c.l.b16 %v1367_v33 }
  0x26   : > { %v1098_v11 = vand.u32 15, %v3165_v8  ;;  %v742_v12 = vadd.s32 8, %v3165_v8  ;;  %v744_v14 = vadd.s32 24, %v3165_v8  ;;  %v743_v40 = vadd.s32 16, %v3165_v8 }
  0x27   : > { %v746_v42 = vadd.s32 40, %v3165_v8  ;;  %v2835_v49 = vunpack.i.l.s16 %v3208_v41 }
  0x28   : > { %vm1286_vm2 = vcmp.gt.s32.totalorder %v1098_v11, 0  ;;  %v1105_v18 = vand.u32 15, %v742_v12  ;;  %v1119_v19 = vand.u32 15, %v744_v14  ;;  %v1112_v54 = vand.u32 15, %v743_v40 }
  0x29   : > { %vm1350_vm4 = vmpackc.low %vm1286_vm2, %vm1286_vm2  ;;  %v1133_v56 = vand.u32 15, %v746_v42  ;;  %vm3222_vm14 = vcmp.ne.s32.totalorder %v2835_v49, %v3216_v51 }
  0x2a   : > { %vm3184_vm5 = vcmp.lt.s32.totalorder %v1105_v18, 15  ;;  %vm3188_vm6 = vcmp.lt.s32.totalorder %v1119_v19, 15  ;;  %v1366_v30 = vsel %vm1350_vm4, 65537, %v2981_v28  ;;  %vm3229_vm15 = vcmp.gt.s32.totalorder %v1112_v54, 0  ;;  %vm3235_vm2 = vmand %vm4379_vm12, %vm4380_vm11 }
  0x2b   : > { %vm1503_vm9 = vmpackc.low %vm3184_vm5, %vm3184_vm5  ;;  %v1382_v34 = vunpack.c.l.b16 %v1366_v30 }
  0x2c   : > { %2825 = vmatmul.msk.bf16.gmra.mxu0 %vm4377_vm1, %v3115_v15  ;;  %vm1505_vm10 = vmpackc.low %vm3188_vm6, %vm3188_vm6  ;;  %v1519_v37 = vsel %vm1503_vm9, 65537, %v2981_v28 }
  0x2d   : > { %v1521_v39 = vsel %vm1505_vm10, 65537, %v2981_v28  ;;  %v2834_v47 = vunpack.i.l.s16 %v1382_v34  ;;  %v1535_v48 = vunpack.c.l.b16 %v1519_v37  ;;  %vm1352_vm5 = vmpackc.low %vm3229_vm15, %vm3229_vm15  ;;  %v745_v37 = vadd.s32 32, %v3165_v8 }
  0x2e   : > { %v1537_v52 = vunpack.c.l.b16 %v1521_v39  ;;  %v1368_v19 = vsel %vm1352_vm5, 65537, %v2981_v28 }
  0x2f   : > { %v1550_v59 = vpack.c.b16 %v1535_v48, %v3208_v41  ;;  %vm1410_vm13 = vcmp.ne.s32.totalorder %v2834_v47, %v3213_v50  ;;  %v1126_v47 = vand.u32 15, %v745_v37  ;;  %v750_v37 = vadd.s32 72, %v3165_v8 }
  0x30   : > { %v3227_v61 = vpack.c.b16 %v1537_v52, %v3208_v41  ;;  %vm3245_vm4 = vmpackc.low %vm3222_vm14, %vm1410_vm13 }
  0x31   : > { %v1558_v11 = vrot.slane %v1550_v59, 7 }
  0x33   : > { %v1573_v18 = vunpack.c.l.b16 %v1558_v11 }
  0x35   : > { %vm1577_vm7 = vcmp.ne.s32.totalorder %v1573_v18, %v3213_v50 }
  0x3c   : > { %2826 = vmatmul.msk.bf16.gmra.mxu0 %vm4377_vm1, %v3121_v22 }
  0x4c   : > { %2827 = vmatmul.msk.bf16.gmra.mxu0 %vm4377_vm1, %v3127_v29 }
  0x5c   : > { %2828 = vmatmul.msk.bf16.gmra.mxu0 %vm4377_vm1, %v3133_v36 }
  0x6c   : > { %2829 = vmatmul.msk.bf16.gmra.mxu0 %vm4377_vm1, %v3142_v43 }
  0x7c   : > { %2830 = vmatmul.msk.bf16.gmra.mxu0 %vm4377_vm1, %v3152_v57 }
  0x8c   : > { %2831 = vmatmul.msk.bf16.gmra.mxu0 %vm4377_vm1, %v3158_v0 }
  0x99   : > { %v670_v13 = vpop.f32.mrf.mxu0 }
  0x9a   : > { %v671_v16 = vadd.f32 %v3170_v9, %v670_v13  ;;  %v1559_v13 = vrot.slane %v3227_v61, 7 }
  0x9c   : > { %2832 = vmatmul.msk.bf16.gmra.mxu0 %vm4377_vm1, %v3172_v10  ;;  %v720_v20 = vmax.f32 %v671_v16, 0.0  ;;  %v1560_v23 = vsel %vm4379_vm12, %v1558_v11, %v1559_v13 }
  0x9d   : > { %v1580_v33 = vunpack.c.l.b16 %v1560_v23  ;;  %v1581_v34 = vunpack.c.h.b16 %v1560_v23 }
  0x9e   : > { %v909_v26 = vsel %vm3180_vm3, 0.0, %v720_v20 }
  0x9f   : > { %v929_v32 = vpack.c.bf16 %v909_v26, %v909_v26  ;;  %v748_v26 = vadd.s32 56, %v3165_v8  ;;  %vm1584_vm10 = vcmp.ne.s32.totalorder %v1580_v33, %v3213_v50  ;;  %vm1585_vm13 = vcmp.ne.s32.totalorder %v1581_v34, %v3216_v51 }
  0xa1   : > { %v672_v24 = vpop.f32.mrf.mxu0  ;;  %v969_v44 = vunpack.c.l.b16 %v929_v32  ;;  %v1147_v39 = vand.u32 15, %v748_v26 }
  0xa2   : > { %v673_v27 = vadd.f32 %v3170_v9, %v672_v24  ;;  %v1574_v24 = vunpack.c.h.b16 %v1558_v11 }
  0xa3   : > { %vm3283_vm15 = vcmp.lt.s32.totalorder %v1147_v39, 15 }
  0xa4   : > { %v721_v31 = vmax.f32 %v673_v27, 0.0  ;;  %vm1578_vm8 = vcmp.ne.s32.totalorder %v1574_v24, %v3216_v51 }
  0xa5   : > { %vm3272_vm9 = vmpackc.low %vm1578_vm8, %vm1577_vm7  ;;  %vm4381_vm7 = vcmask 1046528  }
  0xa6   : > { %v910_v35 = vsel %vm3180_vm3, 0.0, %v721_v31  ;;  %vm3239_vm3 = vcmp.lt.s32.totalorder %v1133_v56, 15  ;;  %v1384_v31 = vunpack.c.l.b16 %v1368_v19  ;;  %vm1509_vm8 = vmpackc.low %vm3283_vm15, %vm3283_vm15  ;;  %vm4378_vm15 = vsmask.f32 7424 }
  0xa7   : > { %v930_v38 = vpack.c.bf16 %v910_v35, %v910_v35  ;;  %vm1507_vm6 = vmpackc.low %vm3239_vm3, %vm3239_vm3  ;;  %v1525_v19 = vsel %vm1509_vm8, 65537, %v2981_v28 }
  0xa8   : > { %v1523_v25 = vsel %vm1507_vm6, 65537, %v2981_v28  ;;  %vm3288_vm3 = vmpackc.low %vm1585_vm13, %vm1584_vm10  ;;  %vm3297_vm6 = vcmp.gt.s32.totalorder %v1126_v47, 0 }
  0xa9   : > { %v970_v45 = vunpack.c.l.b16 %v930_v38  ;;  %v675_v46 = vpop.f32.mrf.mxu0  ;;  %v1539_v35 = vunpack.c.l.b16 %v1523_v25  ;;  %vm1354_vm13 = vmpackc.low %vm3297_vm6, %vm3297_vm6 }
  0xaa   : > { %v676_v55 = vadd.f32 %v3170_v9, %v675_v46  ;;  %v1370_v26 = vsel %vm1354_vm13, 65537, %v2981_v28 }
  0xab   : > { %v989_v53 = vpack.c.b16 %v970_v45, %v969_v44  ;;  %v2836_v44 = vunpack.i.l.s16 %v1384_v31  ;;  %v3279_v46 = vpack.c.b16 %v1539_v35, %v3208_v41  ;;  %v1541_v35 = vunpack.c.l.b16 %v1525_v19 }
  0xac   : > { %v722_v2 = vmax.f32 %v676_v55, 0.0 }
  0xad   : > { %v1001_v58 = vshrl.u32 %v989_v53, 16  ;;  %v1004_v63 = vshll.u32 %v989_v53, 16  ;;  %vm1417_vm5 = vcmp.ne.s32.totalorder %v2836_v44, %v3213_v50  ;;  %v1561_v59 = vrot.slane %v3279_v46, 7 }
  0xae   : > { %v931_v16 = vpack.c.bf16 %v722_v2, %v722_v2  ;;  %vm3317_vm10 = vmpackc.low %vm3222_vm14, %vm1417_vm5 }
  0xaf   : > { %v1003_v62 = vrot.slane %v1001_v58, 7  ;;  %v1562_v18 = vsel %vm4379_vm12, %v1559_v13, %v1561_v59 }
  0xb0   : > { %v971_v27 = vunpack.c.l.b16 %v931_v16  ;;  %v1587_v33 = vunpack.c.l.b16 %v1562_v18  ;;  %v1588_v34 = vunpack.c.h.b16 %v1562_v18 }
  0xb1   : > { %v1006_v5 = vor.u32 %v1004_v63, %v1003_v62  ;;  %v677_v6 = vpop.f32.mrf.mxu0 }
  0xb2   : > { %v678_v12 = vadd.f32 %v3170_v9, %v677_v6  ;;  %vm1591_vm6 = vcmp.ne.s32.totalorder %v1587_v33, %v3213_v50  ;;  %vm1592_vm8 = vcmp.ne.s32.totalorder %v1588_v34, %v3216_v51 }
  0xb3   : > { %v3256_v14 = vsel %vm3235_vm2, 0, %v1006_v5  ;;  %vm3360_vm0 = vmpackc.low %vm1592_vm8, %vm1591_vm6 }
  0xb4   : > { %v723_v17 = vmax.f32 %v678_v12, 0.0  ;;  %v1462_v20 = vsel %vm3245_vm4, %v3256_v14, 0  ;;  %v1636_v56 = vsel %vm3272_vm9, %v3256_v14, 0  ;;  %v1683_v6 = vshll.u32 %v3256_v14, 16 }
  0xb5   : > { %v1774_v5 = vrot.slane %v1636_v56, 1  ;;  %v1681_v39 = vshrl.u32 %v3256_v14, 16 }
  0xb6   : > { %v932_v21 = vpack.c.bf16 %v723_v17, %v723_v17  ;;  %v747_v17 = vadd.s32 48, %v3165_v8  ;;  %v1685_v13 = vrot.slane %v1683_v6, 1 }
  0xb8   : > { %v972_v30 = vunpack.c.l.b16 %v932_v21  ;;  %v1140_v31 = vand.u32 15, %v747_v17 }
  0xb9   : > { %v680_v32 = vpop.f32.mrf.mxu0 }
  0xba   : > { %v990_v38 = vpack.c.b16 %v972_v30, %v971_v27  ;;  %v681_v42 = vadd.f32 %v3170_v9, %v680_v32  ;;  %vm3343_vm5 = vcmp.gt.s32.totalorder %v1140_v31, 0 }
  0xbb   : > { %vm1356_vm13 = vmpackc.low %vm3343_vm5, %vm3343_vm5 }
  0xbc   : > { %v1008_v40 = vshrl.u32 %v990_v38, 16  ;;  %v1011_v49 = vshll.u32 %v990_v38, 16  ;;  %v724_v54 = vmax.f32 %v681_v42, 0.0  ;;  %v1386_v42 = vunpack.c.l.b16 %v1370_v26 }
  0xbd   : > { %v1372_v19 = vsel %vm1356_vm13, 65537, %v2981_v28 }
  0xbe   : > { %v3281_v48 = vrot.slane %v1008_v40, 7  ;;  %v933_v11 = vpack.c.bf16 %v724_v54, %v724_v54  ;;  %v1161_v54 = vand.u32 15, %v750_v37  ;;  %v1388_v37 = vunpack.c.l.b16 %v1372_v19 }
  0xc0   : > { %v1013_v53 = vor.u32 %v1011_v49, %v3281_v48  ;;  %v973_v27 = vunpack.c.l.b16 %v933_v11  ;;  %v1686_v49 = vor.u32 %v1685_v13, %v1681_v39  ;;  %vm3365_vm1 = vcmp.lt.s32.totalorder %v1161_v54, 15 }
  0xc1   : > { %v682_v58 = vpop.f32.mrf.mxu0  ;;  %vm1511_vm6 = vmpackc.low %vm3365_vm1, %vm3365_vm1 }
  0xc2   : > { %v683_v63 = vadd.f32 %v3170_v9, %v682_v58  ;;  %v3303_v1 = vsel %vm4380_vm11, %v1003_v62, %v1013_v53  ;;  %v3350_v53 = vpack.c.b16 %v1541_v35, %v3208_v41  ;;  %v1527_v46 = vsel %vm1511_vm6, 65537, %v2981_v28 }
  0xc3   : > { %v1645_v2 = vsel %vm3245_vm4, %v3303_v1, 0  ;;  %v1637_v4 = vsel %vm3288_vm3, %v3303_v1, 0  ;;  %v1688_v24 = vshll.u32 %v3303_v1, 16  ;;  %v1463_v25 = vsel %vm3317_vm10, %v3303_v1, 0 }
  0xc4   : > { %v725_v12 = vmax.f32 %v683_v63, 0.0  ;;  %1815 = vrot.lane.b32.xlu1 %v1645_v2, %s2982_s14  ;;  %v3322_v16 = vrot.slane %v1637_v4, 1  ;;  %v2838_v63 = vunpack.i.l.s16 %v1386_v42  ;;  %v1563_v11 = vrot.slane %v3350_v53, 7 }
  0xc5   : > { %v1690_v40 = vrot.slane %v1688_v24, 1  ;;  %v1653_v35 = vsel %vm3272_vm9, %v3303_v1, 0  ;;  %v1692_v39 = vshrl.u32 %v3303_v1, 16 }
  0xc6   : > { %v934_v21 = vpack.c.bf16 %v725_v12, %v725_v12  ;;  %v1776_v23 = vsel %vm4381_vm7, %v1774_v5, %v3322_v16  ;;  %vm1424_vm5 = vcmp.ne.s32.totalorder %v2838_v63, %v3213_v50  ;;  %v1864_v52 = vrot.slane %v1653_v35, 1 }
  0xc7   : > { %1791 = vrot.lane.b32.xlu0 %v1776_v23, %s2983_s20  ;;  %v1691_v61 = vsel %vm4378_vm15, %v1686_v49, %v1690_v40  ;;  %vm3398_vm8 = vmpackc.low %vm3222_vm14, %vm1424_vm5  ;;  %v1694_v54 = vor.u32 %v1692_v39, %v1690_v40  ;;  %v2840_v40 = vunpack.i.l.s16 %v1388_v37 }
  0xc8   : > { %v974_v30 = vunpack.c.l.b16 %v934_v21 }
  0xc9   : > { %v685_v32 = vpop.f32.mrf.mxu0  ;;  %vm1431_vm6 = vcmp.ne.s32.totalorder %v2840_v40, %v3213_v50 }
  0xca   : > { %v991_v38 = vpack.c.b16 %v974_v30, %v973_v27  ;;  %v686_v44 = vadd.f32 %v3170_v9, %v685_v32  ;;  %v1564_v32 = vsel %vm4379_vm12, %v1561_v59, %v1563_v11 }
  0xcc   : > { %v1016_v47 = vshrl.u32 %v991_v38, 16  ;;  %v1019_v58 = vshll.u32 %v991_v38, 16  ;;  %v726_v2 = vmax.f32 %v686_v44, 0.0 }
  0xce   : > { %v3352_v56 = vrot.slane %v1016_v47, 7  ;;  %v935_v21 = vpack.c.bf16 %v726_v2, %v726_v2  ;;  %v1594_v47 = vunpack.c.l.b16 %v1564_v32 }
  0xcf   : > { %1748 = vrot.lane.b32.xlu0 %v1691_v61, %s2984_s21  ;;  %v749_v61 = vadd.s32 64, %v3165_v8 }
  0xd0   : > { %v1021_v4 = vor.u32 %v1019_v58, %v3352_v56  ;;  %v975_v59 = vunpack.c.l.b16 %v935_v21  ;;  %v1595_v58 = vunpack.c.h.b16 %v1564_v32  ;;  %vm1598_vm1 = vcmp.ne.s32.totalorder %v1594_v47, %v3213_v50 }
  0xd1   : > { %v687_v6 = vpop.f32.mrf.mxu0  ;;  %v1154_v19 = vand.u32 15, %v749_v61 }
  0xd2   : > { %v3371_v17 = vsel %vm4380_vm11, %v3281_v48, %v1021_v4  ;;  %v688_v18 = vadd.f32 %v3170_v9, %v687_v6  ;;  %v1543_v4 = vunpack.c.l.b16 %v1527_v46  ;;  %vm1599_vm13 = vcmp.ne.s32.totalorder %v1595_v58, %v3216_v51 }
  0xd3   : > { %v1662_v23 = vsel %vm3245_vm4, %v3371_v17, 0  ;;  %v1646_v24 = vsel %vm3317_vm10, %v3371_v17, 0  ;;  %v1638_v48 = vsel %vm3360_vm0, %v3371_v17, 0  ;;  %v1654_v30 = vsel %vm3288_vm3, %v3371_v17, 0  ;;  %vm3439_vm5 = vmpackc.low %vm1599_vm13, %vm1598_vm1 }
  0xd4   : > { %v727_v26 = vmax.f32 %v688_v18, 0.0  ;;  %1905 = vrot.lane.b32.xlu2 %v1662_v23, %s2985_s22  ;;  %1817 = vrot.lane.b32.xlu1 %v1646_v24, %s2982_s14  ;;  %v3387_v27 = vrot.slane %v1638_v48, 1  ;;  %v1696_v13 = vshll.u32 %v3371_v17, 16  ;;  %v3414_v38 = vrot.slane %v1654_v30, 1  ;;  %vm3480_vm13 = vmpackc.low %vm3222_vm14, %vm1431_vm6 }
  0xd5   : > { %v3436_v48 = vpack.c.b16 %v1543_v4, %v3208_v41  ;;  %v1670_v58 = vsel %vm3272_vm9, %v3371_v17, 0  ;;  %vm4483_vm4 = vcmask 31744  }
  0xd6   : > { %v936_v33 = vpack.c.bf16 %v727_v26, %v727_v26  ;;  %v1778_v34 = vsel %vm4381_vm7, %v3322_v16, %v3387_v27  ;;  %v3417_v42 = vrot.slane %v1696_v13, 1  ;;  %v1464_v16 = vsel %vm3398_vm8, %v3371_v17, 0 }
  0xd7   : > { %1793 = vrot.lane.b32.xlu0 %v1778_v34, %s2983_s20  ;;  %v1866_v6 = vsel %vm4381_vm7, %v1864_v52, %v3414_v38  ;;  %v1565_v37 = vrot.slane %v3436_v48, 7 }
  0xd8   : > { %v976_v44 = vunpack.c.l.b16 %v936_v33  ;;  %v1699_v12 = vsel %vm4378_vm15, %v1694_v54, %v3417_v42  ;;  %vm3444_vm15 = vcmp.gt.s32.totalorder %v1154_v19, 0  ;;  %v1954_v19 = vrot.slane %v1670_v58, 1 }
  0xd9   : > { %v690_v49 = vpop.f32.mrf.mxu0  ;;  %vm1358_vm1 = vmpackc.low %vm3444_vm15, %vm3444_vm15  ;;  %v1566_v61 = vsel %vm4379_vm12, %v1563_v11, %v1565_v37 }
  0xda   : > { %v992_v63 = vpack.c.b16 %v976_v44, %v975_v59  ;;  %v691_v2 = vadd.f32 %v3170_v9, %v690_v49  ;;  %v752_v59 = vadd.s32 88, %v3165_v8  ;;  %v1374_v4 = vsel %vm1358_vm1, 65537, %v2981_v28 }
  0xdc   : > { %v1024_v18 = vshrl.u32 %v992_v63, 16  ;;  %1881 = vrot.lane.b32.xlu2 %v1866_v6, %s2986_s23  ;;  %1839 = vrot.lane.b32.xlu1 %v1699_v12, %s2987_s27  ;;  %v1027_v23 = vshll.u32 %v992_v63, 16  ;;  %v728_v24 = vmax.f32 %v691_v2, 0.0  ;;  %v1175_v6 = vand.u32 15, %v752_v59 }
  0xde   : > { %v3433_v21 = vrot.slane %v1024_v18, 7  ;;  %v937_v34 = vpack.c.bf16 %v728_v24, %v728_v24  ;;  %v1602_v24 = vunpack.c.h.b16 %v1566_v61  ;;  %vm3509_vm9 = vcmp.lt.s32.totalorder %v1175_v6, 15 }
  0xdf   : > { %vm1513_vm6 = vmpackc.low %vm3509_vm9, %vm3509_vm9  ;;  %vm4432_vm9 = vsmask.f32 7424 }
  0xe0   : > { %v1029_v26 = vor.u32 %v1027_v23, %v3433_v21  ;;  %v977_v55 = vunpack.c.l.b16 %v937_v34  ;;  %v1601_v23 = vunpack.c.l.b16 %v1566_v61  ;;  %vm1606_vm15 = vcmp.ne.s32.totalorder %v1602_v24, %v3216_v51 }
  0xe1   : > { %v692_v30 = vpop.f32.mrf.mxu0  ;;  %v1529_v6 = vsel %vm1513_vm6, 65537, %v2981_v28 }
  0xe2   : > { %v3450_v33 = vsel %vm4380_vm11, %v3352_v56, %v1029_v26  ;;  %v693_v35 = vadd.f32 %v3170_v9, %v692_v30  ;;  %v1390_v26 = vunpack.c.l.b16 %v1374_v4 }
  0xe3   : > { %v1663_v39 = vsel %vm3317_vm10, %v3450_v33, 0  ;;  %v1647_v46 = vsel %vm3398_vm8, %v3450_v33, 0  ;;  %v1639_v56 = vsel %vm3439_vm5, %v3450_v33, 0  ;;  %v1671_v47 = vsel %vm3288_vm3, %v3450_v33, 0 }
  0xe4   : > { %v729_v44 = vmax.f32 %v693_v35, 0.0  ;;  %1750 = vrot.lane.b32.xlu2 %v1699_v12, %s2984_s21  ;;  %1907 = vrot.lane.b32.xlu1 %v1663_v39, %s2985_s22  ;;  %v1655_v49 = vsel %vm3360_vm0, %v3450_v33, 0  ;;  %v3492_v63 = vrot.slane %v1639_v56, 1  ;;  %v3494_v2 = vrot.slane %v1671_v47, 1 }
  0xe5   : > { %1819 = vrot.lane.b32.xlu0 %v1647_v46, %s2982_s14  ;;  %v3497_v18 = vrot.slane %v1655_v49, 1  ;;  %v1465_v45 = vsel %vm3480_vm13, %v3450_v33, 0  ;;  %v1704_v34 = vshll.u32 %v3450_v33, 16  ;;  %vm1605_vm3 = vcmp.ne.s32.totalorder %v1601_v23, %v3213_v50 }
  0xe6   : > { %v938_v54 = vpack.c.bf16 %v729_v44, %v729_v44  ;;  %v1780_v30 = vsel %vm4381_vm7, %v3387_v27, %v3492_v63  ;;  %v1956_v32 = vsel %vm4381_vm7, %v1954_v19, %v3494_v2  ;;  %v751_v27 = vadd.s32 80, %v3165_v8  ;;  %vm3530_vm1 = vmpackc.low %vm1606_vm15, %vm1605_vm3 }
  0xe7   : > { %v1868_v46 = vsel %vm4381_vm7, %v3414_v38, %v3497_v18  ;;  %v1700_v47 = vshrl.u32 %v3371_v17, 16  ;;  %v1706_v49 = vrot.slane %v1704_v34, 1  ;;  %v2842_v38 = vunpack.i.l.s16 %v1390_v26 }
  0xe8   : > { %v978_v12 = vunpack.c.l.b16 %v938_v54  ;;  %v1168_v54 = vand.u32 15, %v751_v27  ;;  %v753_v34 = vadd.s32 96, %v3165_v8  ;;  %v754_v27 = vadd.s32 104, %v3165_v8 }
  0xe9   : > { %v695_v40 = vpop.f32.mrf.mxu0  ;;  %v1702_v61 = vor.u32 %v1700_v47, %v3417_v42  ;;  %vm1438_vm12 = vcmp.ne.s32.totalorder %v2842_v38, %v3213_v50  ;;  %vm4455_vm10 = vsmask.f32 256 }
  0xea   : > { %v993_v53 = vpack.c.b16 %v978_v12, %v977_v55  ;;  %v696_v11 = vadd.f32 %v3170_v9, %v695_v40  ;;  %vm3547_vm3 = vcmp.gt.s32.totalorder %v1168_v54, 0  ;;  %vm3554_vm15 = vmpackc.low %vm3222_vm14, %vm1438_vm12 }
  0xeb   : > { %v1707_v23 = vsel %vm4432_vm9, %v1702_v61, %v1706_v49  ;;  %vm1360_vm6 = vmpackc.low %vm3547_vm3, %vm3547_vm3  ;;  %v1182_v61 = vand.u32 15, %v753_v34 }
  0xec   : > { %v1032_v39 = vshrl.u32 %v993_v53, 16  ;;  %1795 = vrot.lane.b32.xlu2 %v1780_v30, %s2983_s20  ;;  %1971 = vrot.lane.b32.xlu1 %v1956_v32, %s2988_s28  ;;  %v1035_v44 = vshll.u32 %v993_v53, 16  ;;  %v730_v56 = vmax.f32 %v696_v11, 0.0  ;;  %v1545_v11 = vunpack.c.l.b16 %v1529_v6 }
  0xed   : > { %1883 = vrot.lane.b32.xlu0 %v1868_v46, %s2986_s23  ;;  %v1376_v47 = vsel %vm1360_vm6, 65537, %v2981_v28  ;;  %vm3598_vm12 = vcmp.gt.s32.totalorder %v1182_v61, 0  ;;  %vm4442_vm6 = vsmask.f32 7424 }
  0xee   : > { %v3521_v59 = vrot.slane %v1032_v39, 7  ;;  %v939_v40 = vpack.c.bf16 %v730_v56, %v730_v56  ;;  %v3565_v39 = vpack.c.b16 %v1545_v11, %v3208_v41  ;;  %vm1362_vm3 = vmpackc.low %vm3598_vm12, %vm3598_vm12 }
  0xf0   : > { %v1037_v55 = vor.u32 %v1035_v44, %v3521_v59  ;;  %v979_v24 = vunpack.c.l.b16 %v939_v40 }
  0xf1   : > { %v697_v58 = vpop.f32.mrf.mxu0 }
  0xf2   : > { %v3537_v12 = vsel %vm4380_vm11, %v3433_v21, %v1037_v55  ;;  %v698_v19 = vadd.f32 %v3170_v9, %v697_v58 }
  0xf3   : > { %v1640_v42 = vsel %vm3530_vm1, %v3537_v12, 0  ;;  %v1466_v38 = vsel %vm3554_vm15, %v3537_v12, 0  ;;  %v1648_v55 = vsel %vm3480_vm13, %v3537_v12, 0  ;;  %v1712_v58 = vshll.u32 %v3537_v12, 16 }
  0xf4   : > { %v731_v53 = vmax.f32 %v698_v19, 0.0  ;;  %1841 = vrot.lane.b32.xlu2 %v1707_v23, %s2987_s27  ;;  %1752 = vrot.lane.b32.xlu1 %v1707_v23, %s2984_s21  ;;  %v3558_v32 = vrot.slane %v1640_v42, 1  ;;  %v1664_v40 = vsel %vm3398_vm8, %v3537_v12, 0  ;;  %v1656_v19 = vsel %vm3439_vm5, %v3537_v12, 0 }
  0xf5   : > { %1929 = vrot.lane.b32.xlu0 %v1707_v23, %s2989_s24  ;;  %v1567_v23 = vrot.slane %v3565_v39, 7  ;;  %v1392_v42 = vunpack.c.l.b16 %v1376_v47  ;;  %v3593_v21 = vrot.slane %v1656_v19, 1 }
  0xf6   : > { %v940_v26 = vpack.c.bf16 %v731_v53, %v731_v53  ;;  %v1782_v54 = vsel %vm4381_vm7, %v3492_v63, %v3558_v32  ;;  %v1672_v63 = vsel %vm3360_vm0, %v3537_v12, 0  ;;  %v1189_v53 = vand.u32 15, %v754_v27 }
  0xf7   : > { %vm4439_vm0 = vcmask 1040384   ;;  %v1870_v48 = vsel %vm4381_vm7, %v3497_v18, %v3593_v21  ;;  %v1378_v18 = vsel %vm1362_vm3, 65537, %v2981_v28 }
  0xf8   : > { %v980_v35 = vunpack.c.l.b16 %v940_v26  ;;  %v3596_v26 = vrot.slane %v1712_v58, 1  ;;  %v1568_v5 = vsel %vm4439_vm0, %v1565_v37, %v1567_v23  ;;  %vm3611_vm9 = vcmp.lt.s32.totalorder %v1189_v53, 15 }
  0xf9   : > { %v700_v46 = vpop.f32.mrf.mxu0  ;;  %vm1515_vm12 = vmpackc.low %vm3611_vm9, %vm3611_vm9 }
  0xfa   : > { %v994_v44 = vpack.c.b16 %v980_v35, %v979_v24  ;;  %v701_v56 = vadd.f32 %v3170_v9, %v700_v46  ;;  %v1708_v24 = vshrl.u32 %v3450_v33, 16 }
  0xfc   : > { %v1040_v6 = vshrl.u32 %v994_v44, 16  ;;  %1821 = vrot.lane.b32.xlu2 %v1648_v55, %s2982_s14  ;;  %1797 = vrot.lane.b32.xlu1 %v1782_v54, %s2983_s20  ;;  %v732_v11 = vmax.f32 %v701_v56, 0.0  ;;  %v1043_v46 = vshll.u32 %v994_v44, 16  ;;  %v3604_v55 = vrot.slane %v1672_v63, 1 }
  0xfd   : > { %1909 = vrot.lane.b32.xlu0 %v1664_v40, %s2985_s22  ;;  %v1710_v56 = vor.u32 %v1708_v24, %v1706_v49  ;;  %v2844_v54 = vunpack.i.l.s16 %v1392_v42  ;;  %v1608_v49 = vunpack.c.l.b16 %v1568_v5  ;;  %v1609_v44 = vunpack.c.h.b16 %v1568_v5 }
  0xfe   : > { %v3602_v35 = vrot.slane %v1040_v6, 7  ;;  %v941_v58 = vpack.c.bf16 %v732_v11, %v732_v11  ;;  %v1958_v19 = vsel %vm4381_vm7, %v3494_v2, %v3604_v55  ;;  %v1531_v42 = vsel %vm1515_vm12, 65537, %v2981_v28 }
  0xff   : > { %v1715_v37 = vsel %vm4442_vm6, %v1710_v56, %v3596_v26  ;;  %vm1445_vm0 = vcmp.ne.s32.totalorder %v2844_v54, %v3213_v50  ;;  %vm1612_vm6 = vcmp.ne.s32.totalorder %v1608_v49, %v3213_v50  ;;  %vm1613_vm11 = vcmp.ne.s32.totalorder %v1609_v44, %v3216_v51 }
 0x100   : > { %v1045_v6 = vor.u32 %v1043_v46, %v3602_v35  ;;  %v981_v63 = vunpack.c.l.b16 %v941_v58  ;;  %v755_v2 = vadd.s32 112, %v3165_v8  ;;  %vm4443_vm7 = vsmask.f32 256  ;;  %vm3646_vm9 = vmpackc.low %vm3222_vm14, %vm1445_vm0 }
 0x101   : > { %v702_v27 = vpop.f32.mrf.mxu0  ;;  %v1394_v46 = vunpack.c.l.b16 %v1378_v18  ;;  %vm3652_vm3 = vmpackc.low %vm1613_vm11, %vm1612_vm6  ;;  %vm4452_vm6 = vcmask 1046528  }
 0x102   : > { %v703_v61 = vadd.f32 %v3170_v9, %v702_v27  ;;  %v3642_v11 = vsel %vm4443_vm7, %v3521_v59, %v1045_v6  ;;  %v756_v27 = vadd.s32 120, %v3165_v8  ;;  %v1547_v59 = vunpack.c.l.b16 %v1531_v42 }
 0x103   : > { %v1649_v58 = vsel %vm3554_vm15, %v3642_v11, 0  ;;  %v1657_v8 = vsel %vm3530_vm1, %v3642_v11, 0  ;;  %v2846_v6 = vunpack.i.l.s16 %v1394_v46 }
 0x104   : > { %v733_v40 = vmax.f32 %v703_v61, 0.0  ;;  %1885 = vrot.lane.b32.xlu2 %v1870_v48, %s2986_s23  ;;  %1843 = vrot.lane.b32.xlu1 %v1715_v37, %s2987_s27  ;;  %v1196_v61 = vand.u32 15, %v755_v2  ;;  %v3676_v42 = vrot.slane %v1657_v8, 1 }
 0x105   : > { %1973 = vrot.lane.b32.xlu0 %v1958_v19, %s2988_s28  ;;  %v1203_v19 = vand.u32 15, %v756_v27  ;;  %vm1452_vm7 = vcmp.ne.s32.totalorder %v2846_v6, %v3213_v50  ;;  %v1673_v6 = vsel %vm3439_vm5, %v3642_v11, 0  ;;  %vm4458_vm5 = vmmov %vm4452_vm6 }
 0x106   : > { %v942_v53 = vpack.c.bf16 %v733_v40, %v733_v40  ;;  %v1641_v40 = vsel %vm3652_vm3, %v3642_v11, 0  ;;  %vm3678_vm11 = vcmp.gt.s32.totalorder %v1196_v61, 0  ;;  %v1720_v61 = vshll.u32 %v3642_v11, 16  ;;  %vm3704_vm8 = vmpackc.low %vm3222_vm14, %vm1452_vm7 }
 0x107   : > { %vm3686_vm12 = vcmp.lt.s32.totalorder %v1203_v19, 15  ;;  %vm1364_vm0 = vmpackc.low %vm3678_vm11, %vm3678_vm11  ;;  %v1959_v13 = vrot.slane %v1673_v6, 1 }
 0x108   : > { %v982_v24 = vunpack.c.l.b16 %v942_v53  ;;  %v3674_v53 = vpack.c.b16 %v1547_v59, %v3208_v41  ;;  %v1665_v59 = vsel %vm3480_vm13, %v3642_v11, 0  ;;  %vm4456_vm11 = vmmov %vm4452_vm6  ;;  %v1722_v2 = vrot.slane %v1720_v61, 1 }
 0x109   : > { %v705_v5 = vpop.f32.mrf.mxu0  ;;  %vm1517_vm7 = vmpackc.low %vm3686_vm12, %vm3686_vm12  ;;  %v1960_v39 = vsel %vm4458_vm5, %v3604_v55, %v1959_v13  ;;  %vm4459_vm12 = vsmask.f32 7424 }
 0x10a   : > { %v995_v56 = vpack.c.b16 %v982_v24, %v981_v63  ;;  %v706_v47 = vadd.f32 %v3170_v9, %v705_v5 }
 0x10c   : > { %v1048_v49 = vshrl.u32 %v995_v56, 16  ;;  %v1051_v44 = vshll.u32 %v995_v56, 16  ;;  %1931 = vrot.lane.b32.xlu2 %v1715_v37, %s2989_s24  ;;  %1823 = vrot.lane.b32.xlu1 %v1649_v58, %s2982_s14  ;;  %v734_v63 = vmax.f32 %v706_v47, 0.0  ;;  %v1569_v47 = vrot.slane %v3674_v53, 7 }
 0x10d   : > { %1754 = vrot.lane.b32.xlu0 %v1715_v37, %s2984_s21  ;;  %v3683_v37 = vrot.slane %v1641_v40, 1  ;;  %v1872_v58 = vsel %vm4452_vm6, %v3593_v21, %v3676_v42 }
 0x10e   : > { %v3671_v18 = vrot.slane %v1048_v49, 7  ;;  %v943_v27 = vpack.c.bf16 %v734_v63, %v734_v63  ;;  %v1716_v63 = vshrl.u32 %v3537_v12, 16  ;;  %v4496_v12 = vsel %vm3646_vm9, %v3642_v11, 0 }
 0x10f   : > { %v1784_v21 = vsel %vm4456_vm11, %v3558_v32, %v3683_v37 }
 0x110   : > { %v1053_v24 = vor.u32 %v1051_v44, %v3671_v18  ;;  %v983_v40 = vunpack.c.l.b16 %v943_v27 }
 0x111   : > { %v707_v46 = vpop.f32.mrf.mxu0 }
 0x112   : > { %v708_v56 = vadd.f32 %v3170_v9, %v707_v46  ;;  %v3710_v44 = vsel %vm4455_vm10, %v3602_v35, %v1053_v24  ;;  %v1380_v35 = vsel %vm1364_vm0, 65537, %v2981_v28  ;;  %vm4457_vm10 = vcmask 1040384  }
 0x113   : > { %v1570_v32 = vsel %vm4457_vm10, %v1567_v23, %v1569_v47  ;;  %v1533_v24 = vsel %vm1517_vm7, 65537, %v2981_v28  ;;  %vm4462_vm10 = vsmask.f32 256 }
 0x114   : > { %v735_v8 = vmax.f32 %v708_v56, 0.0  ;;  %1911 = vrot.lane.b32.xlu2 %v1665_v59, %s2985_s22  ;;  %1887 = vrot.lane.b32.xlu1 %v1872_v58, %s2986_s23  ;;  %v1396_v56 = vunpack.c.l.b16 %v1380_v35  ;;  %v1718_v59 = vor.u32 %v1716_v63, %v3596_v26  ;;  %v1615_v58 = vunpack.c.l.b16 %v1570_v32 }
 0x115   : > { %1799 = vrot.lane.b32.xlu0 %v1784_v21, %s2983_s20  ;;  %v1549_v48 = vunpack.c.l.b16 %v1533_v24  ;;  %v1658_v26 = vsel %vm3652_vm3, %v3710_v44, 0  ;;  %v715_v24 = vpop.f32.mrf.mxu2 }
 0x116   : > { %v944_v19 = vpack.c.bf16 %v735_v8, %v735_v8  ;;  %v1616_v8 = vunpack.c.h.b16 %v1570_v32  ;;  %v1723_v23 = vsel %vm4459_vm12, %v1718_v59, %v1722_v2  ;;  %v2848_v6 = vunpack.i.l.s16 %v1396_v56 }
 0x117   : > { %vm1619_vm0 = vcmp.ne.s32.totalorder %v1615_v58, %v3213_v50  ;;  %v1557_v35 = vpack.c.b16 %v1549_v48, %v3208_v41  ;;  %v3752_v63 = vrot.slane %v1658_v26, 1  ;;  %v1666_v48 = vsel %vm3554_vm15, %v3710_v44, 0 }
 0x118   : > { %v984_v5 = vunpack.c.l.b16 %v944_v19  ;;  %vm1620_vm6 = vcmp.ne.s32.totalorder %v1616_v8, %v3216_v51  ;;  %vm1459_vm7 = vcmp.ne.s32.totalorder %v2848_v6, %v3213_v50  ;;  %v1674_v58 = vsel %vm3530_vm1, %v3710_v44, 0 }
 0x119   : > { %v710_v27 = vpop.f32.mrf.mxu0  ;;  %vm3754_vm11 = vmpackc.low %vm1620_vm6, %vm1619_vm0  ;;  %v3760_v59 = vrot.slane %v1557_v35, 7  ;;  %vm4465_vm12 = vcmask 1046528   ;;  %vm4469_vm6 = vsmask.f32 7424 }
 0x11a   : > { %v996_v21 = vpack.c.b16 %v984_v5, %v983_v40  ;;  %v711_v19 = vadd.f32 %v3170_v9, %v710_v27  ;;  %v1642_v27 = vsel %vm3754_vm11, %v3710_v44, 0  ;;  %vm3777_vm5 = vmpackc.low %vm3222_vm14, %vm1459_vm7  ;;  %vm4466_vm14 = vcmask 1040384  }
 0x11b   : > { %v1785_v4 = vrot.slane %v1642_v27, 1  ;;  %vm4467_vm1 = vmmov %vm4465_vm12 }
 0x11c   : > { %v1056_v61 = vshrl.u32 %v996_v21, 16  ;;  %v1059_v28 = vshll.u32 %v996_v21, 16  ;;  %1975 = vrot.lane.b32.xlu2 %v1960_v39, %s2988_s28  ;;  %1933 = vrot.lane.b32.xlu1 %v1723_v23, %s2989_s24  ;;  %v1874_v39 = vsel %vm4465_vm12, %v3676_v42, %v3752_v63  ;;  %v1724_v42 = vshrl.u32 %v3642_v11, 16  ;;  %vm4468_vm0 = vmmov %vm4467_vm1 }
 0x11d   : > { %1845 = vrot.lane.b32.xlu0 %v1723_v23, %s2987_s27 }
 0x11e   : > { %v3747_v55 = vrot.slane %v1056_v61, 7  ;;  %v1728_v61 = vshll.u32 %v3710_v44, 16 }
 0x120   : > { %v1061_v40 = vor.u32 %v1059_v28, %v3747_v55  ;;  %v3791_v28 = vrot.slane %v1674_v58, 1  ;;  %v1730_v35 = vrot.slane %v1728_v61, 1 }
 0x121   : > { %v712_v5 = vpop.f32.mrf.mxu0 }
 0x122   : > { %v713_v56 = vadd.f32 %v3170_v9, %v712_v5  ;;  %v3764_v41 = vsel %vm4462_vm10, %v3671_v18, %v1061_v40  ;;  %v736_v18 = vmax.f32 %v711_v19, 0.0  ;;  %v1726_v40 = vor.u32 %v1724_v42, %v1722_v2 }
 0x123   : > { %v1962_v27 = vsel %vm4468_vm0, %v1959_v13, %v3791_v28  ;;  %v716_v2 = vadd.f32 %v3170_v9, %v715_v24  ;;  %v1659_v24 = vsel %vm3754_vm11, %v3764_v41, 0 }
 0x124   : > { %v737_v21 = vmax.f32 %v713_v56, 0.0  ;;  %1756 = vrot.lane.b32.xlu2 %v1723_v23, %s2984_s21  ;;  %1913 = vrot.lane.b32.xlu1 %v1666_v48, %s2985_s22  ;;  %v1572_v23 = vsel %vm4466_vm14, %v1569_v47, %v3760_v59  ;;  %v945_v6 = vpack.c.bf16 %v736_v18, %v736_v18  ;;  %v717_v56 = vpop.f32.mrf.mxu2  ;;  %v1786_v48 = vsel %vm4467_vm1, %v3683_v37, %v1785_v4  ;;  %vm4472_vm1 = vmmov %vm4468_vm0 }
 0x125   : > { %1889 = vrot.lane.b32.xlu0 %v1874_v39, %s2986_s23  ;;  %v1622_v19 = vunpack.c.l.b16 %v1572_v23  ;;  %v1623_v5 = vunpack.c.h.b16 %v1572_v23  ;;  %v1731_v47 = vsel %vm4469_vm6, %v1726_v40, %v1730_v35  ;;  %v718_v18 = vadd.f32 %v3170_v9, %v717_v56 }
 0x126   : > { %v946_v26 = vpack.c.bf16 %v737_v21, %v737_v21  ;;  %v985_v53 = vunpack.c.l.b16 %v945_v6  ;;  %v827_v37 = vstv %s826_s26  ;;  %v738_v61 = vmax.f32 %v716_v2, 0.0 }
 0x127   : > { %vm1626_vm7 = vcmp.ne.s32.totalorder %v1622_v19, %v3213_v50  ;;  %vm1627_vm10 = vcmp.ne.s32.totalorder %v1623_v5, %v3216_v51  ;;  %v739_v23 = vmax.f32 %v718_v18, 0.0  ;;  %vm828_vm14 = vcmp.eq.s32.totalorder %v827_v37, 1 }
 0x128   : > { %v986_v58 = vunpack.c.l.b16 %v946_v26  ;;  %vm3813_vm12 = vmpackc.low %vm1627_vm10, %vm1626_vm7  ;;  %v1650_v9 = vsel %vm3646_vm9, %v3710_v44, 0  ;;  %v927_v42 = vsel %vm828_vm14, 0.0, %v738_v61  ;;  %v3831_v5 = vrot.slane %v1659_v24, 1 }
 0x129   : > { %v1643_v26 = vsel %vm3813_vm12, %v3764_v41, 0  ;;  %v928_v40 = vsel %vm828_vm14, 0.0, %v739_v23  ;;  %v1736_v37 = vshll.u32 %v3764_v41, 16  ;;  %v1732_v24 = vshrl.u32 %v3710_v44, 16  ;;  %vm4475_vm7 = vmmov %vm4468_vm0 }
 0x12a   : > { %v997_v13 = vpack.c.b16 %v986_v58, %v985_v53  ;;  %v3833_v56 = vrot.slane %v1643_v26, 1  ;;  %v947_v53 = vpack.c.bf16 %v927_v42, %v927_v42  ;;  %v948_v58 = vpack.c.bf16 %v928_v40, %v928_v40 }
 0x12b   : > { %v1876_v2 = vsel %vm4472_vm1, %v3752_v63, %v3831_v5  ;;  %v1675_v63 = vsel %vm3652_vm3, %v3764_v41, 0  ;;  %v1738_v26 = vrot.slane %v1736_v37, 1  ;;  %vm4473_vm6 = vsmask.f32 256 }
 0x12c   : > { %1801 = vrot.lane.b32.xlu2 %v1786_v48, %s2983_s20  ;;  %1977 = vrot.lane.b32.xlu1 %v1962_v27, %s2988_s28  ;;  %v1064_v6 = vshrl.u32 %v997_v13, 16  ;;  %v1067_v27 = vshll.u32 %v997_v13, 16  ;;  %v1788_v18 = vsel %vm4468_vm0, %v1785_v4, %v3833_v56  ;;  %v1667_v13 = vsel %vm3646_vm9, %v3764_v41, 0  ;;  %vm4478_vm1 = vmmov %vm4473_vm6 }
 0x12d   : > { %1935 = vrot.lane.b32.xlu0 %v1731_v47, %s2989_s24  ;;  %v987_v23 = vunpack.c.l.b16 %v947_v53  ;;  %v1963_v40 = vrot.slane %v1675_v63, 1  ;;  %vm4474_vm3 = vsmask.f32 7424  ;;  %vm4476_vm10 = vcmask 1040384   ;;  %v2882_v63 = vld [vmem:[%s4370_s5] sm:$0xff] }
 0x12e   : > { %v3809_v21 = vpop.permute.xlu2 %1905  ;;  %v1066_v48 = vrot.slane %v1064_v6, 7  ;;  %v988_v6 = vunpack.c.l.b16 %v948_v58  ;;  %v1734_v58 = vor.u32 %v1732_v24, %v1730_v35  ;;  %v1740_v24 = vshrl.u32 %v3764_v41, 16  ;;  %vm4477_vm14 = vmmov %vm4474_vm3 }
 0x130   : > { %v1069_v61 = vor.u32 %v1067_v27, %v1066_v48  ;;  %v2132_v27 = vld [vmem:[%s4370_s5 + $0x8] sm:$0x1]  ;;  %v998_v53 = vpack.c.b16 %v988_v6, %v987_v23 }
 0x131   : > { %v2142_v54 = vunpack.c.l.b16 %v2132_v27 }
 0x132   : > { %v3859_v42 = vsel %vm4473_vm6, %v3747_v55, %v1069_v61  ;;  %v1964_v55 = vsel %vm4475_vm7, %v3791_v28, %v1963_v40  ;;  %v1072_v37 = vshrl.u32 %v998_v53, 16  ;;  %v1075_v28 = vshll.u32 %v998_v53, 16 }
 0x133   : > { %v1660_v53 = vsel %vm3813_vm12, %v3859_v42, 0 }
 0x134   : > { %1847 = vrot.lane.b32.xlu2 %v1731_v47, %s2987_s27  ;;  %1758 = vrot.lane.b32.xlu1 %v1731_v47, %s2984_s21 }
 0x135   : > { %1825 = vrot.lane.b32.xlu0 %v1650_v9, %s2982_s14 }
 0x136   : > { %v3829_v19 = vpop.permute.xlu2 %1881  ;;  %v3852_v4 = vpop.permute.xlu1 %1815 }
 0x139   : > { %v3835_v47 = vpop.permute.xlu0 %1791 }
 0x13c   : > { %1891 = vrot.lane.b32.xlu2 %v1876_v2, %s2986_s23  ;;  %1803 = vrot.lane.b32.xlu1 %v1788_v18, %s2983_s20  ;;  %v1739_v2 = vsel %vm4474_vm3, %v1734_v58, %v1738_v26  ;;  %v1744_v18 = vshll.u32 %v3859_v42, 16  ;;  %v3880_v58 = vrot.slane %v1072_v37, 7 }
 0x13d   : > { %1915 = vrot.lane.b32.xlu0 %v1667_v13, %s2985_s22  ;;  %v2144_v13 = vpack.c.b16 %v2142_v54, %v2142_v54  ;;  %v1742_v54 = vor.u32 %v1740_v24, %v1738_v26 }
 0x13e   : > { %v3854_v9 = vpop.permute.xlu2 %1750  ;;  %v1746_v27 = vrot.slane %v1744_v18, 1  ;;  %v1077_v26 = vor.u32 %v1075_v28, %v3880_v58  ;;  %v1629_v28 = vunpack.c.l.b16 %v3760_v59 }
 0x13f   : > { %v2165_v23 = vsel %vm4476_vm10, %v2144_v13, 0  ;;  %v1651_v13 = vsel %vm3704_vm8, %v3764_v41, 0  ;;  %vm4482_vm10 = vmmov %vm4468_vm0 }
 0x140   : > { %2173 = vmatpush.bf16.msra.mxu1 %v2165_v23  ;;  %v1676_v23 = vsel %vm3754_vm11, %v3859_v42, 0  ;;  %vm4479_vm11 = vmmov %vm4468_vm0  ;;  %vm1633_vm6 = vcmp.ne.s32.totalorder %v1629_v28, %v3213_v50 }
 0x141   : > { %v1749_v61 = vpop.permute.xlu0 %1748  ;;  %v1965_v24 = vrot.slane %v1676_v23, 1 }
 0x143   : > { %v1966_v32 = vsel %vm4479_vm11, %v1963_v40, %v1965_v24  ;;  %vm2045_vm11 = vcmask 64512  }
 0x144   : > { %1937 = vrot.lane.b32.xlu2 %v1739_v2, %s2989_s24  ;;  %1849 = vrot.lane.b32.xlu1 %v1739_v2, %s2987_s27 }
 0x145   : > { %1979 = vrot.lane.b32.xlu0 %v1964_v55, %s2988_s28  ;;  %2174 = vmatpush.bf16.msra.mxu1 %v2882_v63  ;;  %v1747_v55 = vsel %vm4477_vm14, %v1742_v54, %v1746_v27  ;;  %v3900_v54 = vrot.slane %v1660_v53, 1 }
 0x146   : > { %v3872_v35 = vpop.permute.xlu2 %1795  ;;  %v3874_v6 = vpop.permute.xlu1 %1817 }
 0x147   : > { %v1878_v60 = vsel %vm4468_vm0, %v3831_v5, %v3900_v54  ;;  %v1831_v5 = vshrl.u32 %v3859_v42, 16  ;;  %vm2062_vm0 = vcmask 80896  }
 0x149   : > { %v3898_v63 = vpop.permute.xlu0 %1793 }
 0x14c   : > { %1827 = vrot.lane.b32.xlu2 %v1651_v13, %s2982_s14  ;;  %1939 = vrot.lane.b32.xlu1 %v1747_v55, %s2989_s24  ;;  %v3903_v13 = vsel %vm4478_vm1, %v1066_v48, %v1077_v26  ;;  %vm2028_vm1 = vcmask 48128  }
 0x14d   : > { %1760 = vrot.lane.b32.xlu0 %v1739_v2, %s2984_s21  ;;  %v1630_v2 = vunpack.c.h.b16 %v3760_v59  ;;  %v1677_v23 = vsel %vm3813_vm12, %v3903_v13, 0  ;;  %v1835_v48 = vshll.u32 %v3903_v13, 16  ;;  %vm1987_vm12 = vcmask 15360  }
 0x14e   : > { %v3896_v18 = vpop.permute.xlu2 %1841  ;;  %v1840_v37 = vpop.permute.xlu1 %1839  ;;  %v3925_v59 = vrot.slane %v1677_v23, 1  ;;  %v1668_v23 = vsel %vm3704_vm8, %v3859_v42, 0  ;;  %v1993_v3 = vsel %vm1987_vm12, %v1463_v25, %v3854_v9 }
 0x14f   : > { %vm1634_vm3 = vcmp.ne.s32.totalorder %v1630_v2, %v3216_v51  ;;  %v1837_v39 = vrot.slane %v1835_v48, 1 }
 0x150   : > { %vm3934_vm7 = vmpackc.low %vm1634_vm3, %vm1633_vm6  ;;  %v1968_v50 = vsel %vm4482_vm10, %v1965_v24, %v3925_v59  ;;  %vm2079_vm3 = vcmask 97280  }
 0x151   : > { %v1644_v14 = vsel %vm3934_vm7, %v3859_v42, 0  ;;  %vm4484_vm6 = vmmov %vm4482_vm10  ;;  %vm2096_vm10 = vcmask 113664  }
 0x152   : > { %v1789_v28 = vrot.slane %v1644_v14, 1 }
 0x154   : > { %1981 = vrot.lane.b32.xlu2 %v1966_v32, %s2988_s28  ;;  %1893 = vrot.lane.b32.xlu1 %v1878_v60, %s2986_s23  ;;  %v1833_v60 = vor.u32 %v1831_v5, %v1746_v27  ;;  %v1990_v32 = vsel %vm1987_vm12, %v1462_v20, %v1749_v61  ;;  %v1790_v5 = vsel %vm4484_vm6, %v3833_v56, %v1789_v28  ;;  %v1093_v56 = vsel %vm3235_vm2, %v3880_v58, 0 }
 0x155   : > { %1851 = vrot.lane.b32.xlu0 %v1747_v55, %s2987_s27  ;;  %v2013_v7 = vsel %vm4483_vm4, %v1990_v32, %v3835_v47  ;;  %v1652_v47 = vsel %vm3777_vm5, %v3859_v42, 0  ;;  %vm4384_vm4 = vcmask 146432   ;;  %v1678_v58 = vsel %vm3934_vm7, %v1093_v56, 0 }
 0x156   : > { %v3918_v40 = vpop.permute.xlu2 %1821  ;;  %v3920_v53 = vpop.permute.xlu1 %1907  ;;  %v1838_v51 = vsel %vm4477_vm14, %v1833_v60, %v1837_v39  ;;  %v2030_v24 = vsel %vm2028_vm1, %v2013_v7, %v3852_v4  ;;  %v1661_v4 = vsel %vm3934_vm7, %v3903_v13, 0  ;;  %vm2113_vm14 = vcmask 130048  }
 0x157   : > { %v3923_v26 = vpop.permute.xlu0 %1819  ;;  %v2047_v2 = vsel %vm2045_vm11, %v2030_v24, %v1840_v37  ;;  %v1879_v32 = vrot.slane %v1661_v4, 1  ;;  %v1921_v7 = vshrl.u32 %v3903_v13, 16  ;;  %vm4488_vm7 = vcmask 1046528  }
 0x158   : > { %v2064_v48 = vsel %vm2062_vm0, %v2047_v2, %v3829_v19  ;;  %v1969_v2 = vrot.slane %v1678_v58, 1 }
 0x159   : > { %v2081_v19 = vsel %vm2079_vm3, %v2064_v48, %v3809_v21  ;;  %v1925_v21 = vshll.u32 %v1093_v56, 16  ;;  %v1880_v14 = vsel %vm4484_vm6, %v3900_v54, %v1879_v32  ;;  %v1923_v28 = vor.u32 %v1921_v7, %v1837_v39 }
 0x15a   : > { %vm4487_vm6 = vsmask.f32 7424  ;;  %v1970_v9 = vsel %vm4488_vm7, %v3925_v59, %v1969_v2 }
 0x15b   : > { %v1927_v54 = vrot.slane %v1925_v21, 1 }
 0x15c   : > { %1917 = vrot.lane.b32.xlu2 %v1668_v23, %s2985_s22  ;;  %1983 = vrot.lane.b32.xlu1 %v1968_v50, %s2988_s28  ;;  %v1669_v50 = vsel %vm3777_vm5, %v3903_v13, 0 }
 0x15d   : > { %1941 = vrot.lane.b32.xlu0 %v1838_v51, %s2989_s24  ;;  %v1928_v46 = vsel %vm4487_vm6, %v1923_v28, %v1927_v54  ;;  %vm4491_vm6 = vcmask 31744  }
 0x15e   : > { %v3952_v20 = vpop.permute.xlu2 %1885  ;;  %v1972_v61 = vpop.permute.xlu1 %1971 }
 0x15f   : > { %v1884_v27 = vpop.permute.xlu0 %1883 }
 0x164   : > { %1762 = vrot.lane.b32.xlu2 %v1747_v55, %s2984_s21  ;;  %1829 = vrot.lane.b32.xlu1 %v1652_v47, %s2982_s14  ;;  %s2990_s14 = smov 124   ;;  %s2992_s21 = smov 122  }
 0x165   : > { %1805 = vrot.lane.b32.xlu0 %v1790_v5, %s2983_s20  ;;  %s2991_s20 = smov 126  }
 0x166   : > { %v1932_v37 = vpop.permute.xlu2 %1931  ;;  %v1753_v42 = vpop.permute.xlu1 %1752 }
 0x167   : > { %v1930_v55 = vpop.permute.xlu0 %1929  ;;  %v1996_v59 = vsel %vm1987_vm12, %v1464_v16, %v1753_v42 }
 0x168   : > { %v2098_v60 = vsel %vm2096_vm10, %v2081_v19, %v1930_v55 }
 0x169   : > { %v2115_v23 = vsel %vm2113_vm14, %v2098_v60, %v1972_v61 }
 0x16a   : > { %2854 = vmatmul.msk.bf16.vlgmr.msra.gmra.mxu1 %vm4384_vm4, %v2115_v23  ;;  %vm4486_vm4 = vcmask 31744  }
 0x16b   : > { %v2015_v13 = vsel %vm4486_vm4, %v1993_v3, %v3898_v63  ;;  %vm4489_vm4 = vcmask 146432  }
 0x16c   : > { %1853 = vrot.lane.b32.xlu2 %v1838_v51, %s2987_s27  ;;  %1919 = vrot.lane.b32.xlu1 %v1669_v50, %s2985_s22  ;;  %v2032_v62 = vsel %vm2028_vm1, %v2015_v13, %v3874_v6  ;;  %vm4492_vm7 = vmmov %vm4489_vm4 }
 0x16d   : > { %1895 = vrot.lane.b32.xlu0 %v1880_v14, %s2986_s23  ;;  %v2049_v1 = vsel %vm2045_vm11, %v2032_v62, %v3896_v18  ;;  %vm4494_vm13 = vmmov %vm4492_vm7 }
 0x16e   : > { %v1912_v51 = vpop.permute.xlu2 %1911  ;;  %v1798_v61 = vpop.permute.xlu1 %1797  ;;  %v2066_v25 = vsel %vm2062_vm0, %v2049_v1, %v1884_v27  ;;  %vm4497_vm15 = vmmov %vm4492_vm7 }
 0x16f   : > { %v1910_v24 = vpop.permute.xlu0 %1909  ;;  %v2083_v63 = vsel %vm2079_vm3, %v2066_v25, %v3920_v53  ;;  %v2017_v53 = vsel %vm4491_vm6, %v1996_v59, %v3872_v35  ;;  %vm4500_vm9 = vmmov %vm4492_vm7 }
 0x170   : > { %v2100_v6 = vsel %vm2096_vm10, %v2083_v63, %v1932_v37  ;;  %v2034_v37 = vsel %vm2028_vm1, %v2017_v53, %v3923_v26 }
 0x174   : > { %1943 = vrot.lane.b32.xlu2 %v1928_v46, %s2989_s24 }
 0x175   : > { %1985 = vrot.lane.b32.xlu0 %v1970_v9, %s2988_s28 }
 0x176   : > { %v1844_v39 = vpop.permute.xlu1 %1843  ;;  %v1976_v48 = vpop.permute.xlu2 %1975 }
 0x177   : > { %v1974_v47 = vpop.permute.xlu0 %1973  ;;  %v2051_v60 = vsel %vm2045_vm11, %v2034_v37, %v1844_v39  ;;  %v4499_v37 = vsel %vm3704_vm8, %v3710_v44, 0  ;;  %vm4503_vm8 = vmmov %vm4500_vm9 }
 0x178   : > { %v2117_v18 = vsel %vm2113_vm14, %v2100_v6, %v1974_v47  ;;  %v2068_v32 = vsel %vm2062_vm0, %v2051_v60, %v3952_v20 }
 0x179   : > { %v2085_v17 = vsel %vm2079_vm3, %v2068_v32, %v1910_v24 }
 0x17a   : > { %2855 = vmatmul.msk.bf16.gmra.mxu1 %vm4489_vm4, %v2117_v18  ;;  %vm4493_vm4 = vmmov %vm4491_vm6 }
 0x17b   : > { %vm4495_vm2 = vmmov %vm4493_vm4 }
 0x17c   : > { %vm4498_vm6 = vmmov %vm4495_vm2 }
 0x17e   : > { %v1824_v27 = vpop.permute.xlu1 %1823  ;;  %v1757_v4 = vpop.permute.xlu2 %1756 }
 0x17f   : > { %v1755_v5 = vpop.permute.xlu0 %1754 }
 0x180   : > { %v1999_v35 = vsel %vm1987_vm12, %v1465_v45, %v1755_v5 }
 0x181   : > { %v2019_v26 = vsel %vm4493_vm4, %v1999_v35, %v1798_v61  ;;  %vm4504_vm4 = vmmov %vm4495_vm2 }
 0x182   : > { %v2036_v21 = vsel %vm2028_vm1, %v2019_v26, %v3918_v40  ;;  %v2002_v40 = vsel %vm1987_vm12, %v1466_v38, %v1757_v4 }
 0x186   : > { %v1888_v19 = vpop.permute.xlu1 %1887  ;;  %v1802_v56 = vpop.permute.xlu2 %1801 }
 0x187   : > { %v1800_v55 = vpop.permute.xlu0 %1799 }
 0x188   : > { %v2021_v2 = vsel %vm4495_vm2, %v2002_v40, %v1800_v55 }
 0x189   : > { %v2038_v1 = vsel %vm2028_vm1, %v2021_v2, %v1824_v27 }
 0x18e   : > { %v1934_v31 = vpop.permute.xlu1 %1933  ;;  %v1848_v20 = vpop.permute.xlu2 %1847 }
 0x18f   : > { %v2102_v16 = vsel %vm2096_vm10, %v2085_v17, %v1934_v31  ;;  %v1846_v42 = vpop.permute.xlu0 %1845  ;;  %v2055_v25 = vsel %vm2045_vm11, %v2038_v1, %v1848_v20 }
 0x190   : > { %v2119_v23 = vsel %vm2113_vm14, %v2102_v16, %v1976_v48  ;;  %v2053_v14 = vsel %vm2045_vm11, %v2036_v21, %v1846_v42  ;;  %v4502_v21 = vsel %vm3777_vm5, %v3764_v41, 0  ;;  %v4094_v41 = vld [vmem:[%s4371_s6] ss:$0 sm:$0xff]  ;;  %vm4505_vm5 = vmmov %vm4503_vm8 }
 0x191   : > { %2856 = vmatmul.msk.bf16.gmra.mxu1 %vm4492_vm7, %v2119_v23  ;;  %v2070_v3 = vsel %vm2062_vm0, %v2053_v14, %v1888_v19  ;;  %vm4501_vm7 = vmmov %vm4495_vm2 }
 0x192   : > { %v2087_v13 = vsel %vm2079_vm3, %v2070_v3, %v1912_v51 }
 0x196   : > { %v1914_v50 = vpop.permute.xlu1 %1913  ;;  %v1892_v24 = vpop.permute.xlu2 %1891 }
 0x197   : > { %v1890_v7 = vpop.permute.xlu0 %1889 }
 0x198   : > { %v2072_v46 = vsel %vm2062_vm0, %v2055_v25, %v1890_v7 }
 0x199   : > { %v2089_v63 = vsel %vm2079_vm3, %v2072_v46, %v1914_v50 }
 0x19e   : > { %v1978_v58 = vpop.permute.xlu1 %1977  ;;  %v1938_v54 = vpop.permute.xlu2 %1937 }
 0x19f   : > { %v1936_v52 = vpop.permute.xlu0 %1935  ;;  %v2106_v30 = vsel %vm2096_vm10, %v2089_v63, %v1938_v54 }
 0x1a0   : > { %v2104_v33 = vsel %vm2096_vm10, %v2087_v13, %v1936_v52 }
 0x1a1   : > { %v2121_v45 = vsel %vm2113_vm14, %v2104_v33, %v1978_v58 }
 0x1a2   : > { %2857 = vmatmul.msk.bf16.gmra.mxu1 %vm4494_vm13, %v2121_v45 }
 0x1a6   : > { %v1759_v61 = vpop.permute.xlu1 %1758  ;;  %v1828_v9 = vpop.permute.xlu2 %1827 }
 0x1a7   : > { %v1826_v28 = vpop.permute.xlu0 %1825  ;;  %v2005_v38 = vsel %vm1987_vm12, %v4496_v12, %v1759_v61 }
 0x1a8   : > { %v2023_v48 = vsel %vm4498_vm6, %v2005_v38, %v1802_v56 }
 0x1a9   : > { %v2040_v18 = vsel %vm2028_vm1, %v2023_v48, %v1826_v28 }
 0x1ae   : > { %v1804_v51 = vpop.permute.xlu1 %1803  ;;  %v1982_v27 = vpop.permute.xlu2 %1981 }
 0x1af   : > { %v1916_v62 = vpop.permute.xlu0 %1915 }
 0x1b6   : > { %v1850_v39 = vpop.permute.xlu1 %1849  ;;  %v1918_v32 = vpop.permute.xlu2 %1917 }
 0x1b7   : > { %v1980_v6 = vpop.permute.xlu0 %1979  ;;  %v2057_v5 = vsel %vm2045_vm11, %v2040_v18, %v1850_v39 }
 0x1b8   : > { %v2123_v47 = vsel %vm2113_vm14, %v2106_v30, %v1980_v6  ;;  %v2074_v34 = vsel %vm2062_vm0, %v2057_v5, %v1892_v24 }
 0x1b9   : > { %2858 = vmatmul.msk.bf16.gmra.mxu1 %vm4497_vm15, %v2123_v47  ;;  %v2091_v11 = vsel %vm2079_vm3, %v2074_v34, %v1916_v62 }
 0x1be   : > { %v1940_v59 = vpop.permute.xlu1 %1939  ;;  %v1763_v35 = vpop.permute.xlu2 %1762 }
 0x1bf   : > { %v1761_v4 = vpop.permute.xlu0 %1760  ;;  %v2108_v53 = vsel %vm2096_vm10, %v2091_v11, %v1940_v59  ;;  %v2011_v14 = vsel %vm1987_vm12, %v4502_v21, %v1763_v35 }
 0x1c0   : > { %v2008_v55 = vsel %vm1987_vm12, %v4499_v37, %v1761_v4  ;;  %v2125_v56 = vsel %vm2113_vm14, %v2108_v53, %v1982_v27 }
 0x1c1   : > { %v2025_v31 = vsel %vm4501_vm7, %v2008_v55, %v1804_v51 }
 0x1c2   : > { %v2042_v17 = vsel %vm2028_vm1, %v2025_v31, %v1828_v9 }
 0x1c6   : > { %v1894_v19 = vpop.permute.xlu1 %1893  ;;  %v1854_v58 = vpop.permute.xlu2 %1853 }
 0x1c7   : > { %v1852_v60 = vpop.permute.xlu0 %1851 }
 0x1c8   : > { %v2059_v16 = vsel %vm2045_vm11, %v2042_v17, %v1852_v60 }
 0x1c9   : > { %2859 = vmatmul.msk.bf16.gmra.mxu1 %vm4500_vm9, %v2125_v56  ;;  %v2076_v49 = vsel %vm2062_vm0, %v2059_v16, %v1894_v19 }
 0x1ca   : > { %v2093_v44 = vsel %vm2079_vm3, %v2076_v49, %v1918_v32  ;;  %v2448_v49 = vld [vmem:[%s4372_s7] sm:$0x1] }
 0x1ce   : > { %v1984_v42 = vpop.permute.xlu1 %1983  ;;  %v1944_v8 = vpop.permute.xlu2 %1943 }
 0x1cf   : > { %v1942_v23 = vpop.permute.xlu0 %1941 }
 0x1d0   : > { %v2110_v26 = vsel %vm2096_vm10, %v2093_v44, %v1942_v23  ;;  %v2449_v23 = vld [vmem:[%s4373_s8] sm:$0x3] }
 0x1d1   : > { %v2127_v7 = vsel %vm2113_vm14, %v2110_v26, %v1984_v42 }
 0x1d6   : > { %v1830_v20 = vpop.permute.xlu1 %1829 }
 0x1d7   : > { %v1806_v50 = vpop.permute.xlu0 %1805 }
 0x1d8   : > { %v2027_v3 = vsel %vm4504_vm4, %v2011_v14, %v1806_v50 }
 0x1d9   : > { %2860 = vmatmul.msk.bf16.gmra.mxu1 %vm4503_vm8, %v2127_v7  ;;  %v2044_v13 = vsel %vm2028_vm1, %v2027_v3, %v1830_v20  ;;  %vm4506_vm1 = vcmask 1041408  }
 0x1da   : > { %v2061_v24 = vsel %vm2045_vm11, %v2044_v13, %v1854_v58  ;;  %v2451_v35 = vsel %vm4506_vm1, %v2449_v23, 0  ;;  %vm4507_vm11 = vcmask 1040384  }
 0x1db   : > { %v2527_v44 = vsel %vm4507_vm11, %v2448_v49, 0  ;;  %2460 = vmatpush.bf16.msrb.mxu2 %v2451_v35 }
 0x1dc   : > { %2536 = vmatpush.bf16.msra.mxu3 %v2527_v44 }
 0x1de   : > { %v1920_v33 = vpop.permute.xlu1 %1919 }
 0x1df   : > { %v1896_v52 = vpop.permute.xlu0 %1895 }
 0x1e0   : > { %v2078_v45 = vsel %vm2062_vm0, %v2061_v24, %v1896_v52  ;;  %vm4508_vm0 = vmmov %vm4495_vm2 }
 0x1e1   : > { %v2095_v61 = vsel %vm2079_vm3, %v2078_v45, %v1920_v33  ;;  %2862 = vmatmul.msk.bf16.vlgmr.msrb.gmra.mxu2 %vm4508_vm0, %v3115_v15  ;;  %vm4509_vm3 = vmmov %vm4508_vm0 }
 0x1e2   : > { %v2112_v40 = vsel %vm2096_vm10, %v2095_v61, %v1944_v8  ;;  %vm4510_vm10 = vmmov %vm4508_vm0 }
 0x1e3   : > { %vm4512_vm13 = vmmov %vm4508_vm0 }
 0x1e4   : > { %vm4513_vm2 = vmmov %vm4508_vm0 }
 0x1e5   : > { %vm4514_vm15 = vmmov %vm4508_vm0 }
 0x1e6   : > { %vm4515_vm6 = vmmov %vm4508_vm0 }
 0x1e7   : > { %v2176_v28 = vpop.f32.mrf.mxu1  ;;  %v1986_v54 = vpop.permute.xlu0 %1985 }
 0x1e8   : > { %v2177_v2 = vadd.f32 %v4094_v41, %v2176_v28  ;;  %v2129_v51 = vsel %vm2113_vm14, %v2112_v40, %v1986_v54  ;;  %vm4511_vm14 = vmmov %vm4508_vm0 }
 0x1e9   : > { %2861 = vmatmul.msk.bf16.gmra.mxu1 %vm4505_vm5, %v2129_v51 }
 0x1ea   : > { %v4100_v62 = vmax.f32 %v2177_v2, 0.0 }
 0x1ec   : > { %2312 = vrot.lane.b32.xlu0 %v4100_v62, %s2990_s14  ;;  %2248 = vrot.lane.b32.xlu1 %v4100_v62, %s2991_s20 }
 0x1ef   : > { %v2178_v1 = vpop.f32.mrf.mxu1 }
 0x1f0   : > { %v2179_v25 = vadd.f32 %v4094_v41, %v2178_v1 }
 0x1f1   : > { %2863 = vmatmul.msk.bf16.gmra.mxu2 %vm4509_vm3, %v3121_v22 }
 0x1f2   : > { %v4107_v46 = vmax.f32 %v2179_v25, 0.0 }
 0x1f4   : > { %2250 = vrot.lane.b32.xlu2 %v4107_v46, %s2991_s20  ;;  %2378 = vrot.lane.b32.xlu0 %v4107_v46, %s2992_s21 }
 0x1f5   : > { %2314 = vrot.lane.b32.xlu1 %v4107_v46, %s2990_s14 }
 0x1f7   : > { %v2181_v9 = vpop.f32.mrf.mxu1 }
 0x1f8   : > { %v2182_v63 = vadd.f32 %v4094_v41, %v2181_v9 }
 0x1fa   : > { %v4116_v39 = vmax.f32 %v2182_v63, 0.0 }
 0x1fc   : > { %2376 = vrot.lane.b32.xlu2 %v4100_v62, %s2992_s21  ;;  %2316 = vrot.lane.b32.xlu0 %v4116_v39, %s2990_s14 }
 0x1fd   : > { %2252 = vrot.lane.b32.xlu1 %v4116_v39, %s2991_s20 }
 0x1ff   : > { %v2183_v30 = vpop.f32.mrf.mxu1 }
 0x200   : > { %v2184_v12 = vadd.f32 %v4094_v41, %v2183_v30 }
 0x201   : > { %2864 = vmatmul.msk.bf16.gmra.mxu2 %vm4510_vm10, %v3127_v29 }
 0x202   : > { %v4125_v38 = vmax.f32 %v2184_v12, 0.0 }
 0x204   : > { %2254 = vrot.lane.b32.xlu2 %v4125_v38, %s2991_s20  ;;  %2382 = vrot.lane.b32.xlu0 %v4125_v38, %s2992_s21 }
 0x205   : > { %2318 = vrot.lane.b32.xlu1 %v4125_v38, %s2990_s14 }
 0x20c   : > { %2380 = vrot.lane.b32.xlu2 %v4116_v39, %s2992_s21 }
 0x20e   : > { %v2186_v6 = vpop.f32.mrf.mxu1 }
 0x20f   : > { %v2187_v47 = vadd.f32 %v4094_v41, %v2186_v6 }
 0x211   : > { %v4136_v48 = vmax.f32 %v2187_v47, 0.0  ;;  %2865 = vmatmul.msk.bf16.gmra.mxu2 %vm4511_vm14, %v3133_v36 }
 0x213   : > { %2320 = vrot.lane.b32.xlu0 %v4136_v48, %s2990_s14  ;;  %2256 = vrot.lane.b32.xlu1 %v4136_v48, %s2991_s20 }
 0x216   : > { %v2188_v18 = vpop.f32.mrf.mxu1 }
 0x217   : > { %v2189_v27 = vadd.f32 %v4094_v41, %v2188_v18 }
 0x219   : > { %v4143_v5 = vmax.f32 %v2189_v27, 0.0 }
 0x21b   : > { %2258 = vrot.lane.b32.xlu2 %v4143_v5, %s2991_s20  ;;  %2386 = vrot.lane.b32.xlu0 %v4143_v5, %s2992_s21 }
 0x21c   : > { %2322 = vrot.lane.b32.xlu1 %v4143_v5, %s2990_s14 }
 0x21f   : > { %v2191_v59 = vpop.f32.mrf.mxu1 }
 0x220   : > { %v2192_v4 = vadd.f32 %v4094_v41, %v2191_v59 }
 0x221   : > { %2866 = vmatmul.msk.bf16.gmra.mxu2 %vm4512_vm13, %v3142_v43 }
 0x222   : > { %v4152_v34 = vmax.f32 %v2192_v4, 0.0 }
 0x223   : > { %2384 = vrot.lane.b32.xlu2 %v4136_v48, %s2992_s21 }
 0x224   : > { %2324 = vrot.lane.b32.xlu0 %v4152_v34, %s2990_s14  ;;  %2260 = vrot.lane.b32.xlu1 %v4152_v34, %s2991_s20 }
 0x227   : > { %v2193_v11 = vpop.f32.mrf.mxu1 }
 0x228   : > { %v2194_v53 = vadd.f32 %v4094_v41, %v2193_v11 }
 0x22a   : > { %v4161_v19 = vmax.f32 %v2194_v53, 0.0 }
 0x22c   : > { %2262 = vrot.lane.b32.xlu2 %v4161_v19, %s2991_s20  ;;  %2390 = vrot.lane.b32.xlu0 %v4161_v19, %s2992_s21 }
 0x22d   : > { %2326 = vrot.lane.b32.xlu1 %v4161_v19, %s2990_s14 }
 0x231   : > { %2867 = vmatmul.msk.bf16.gmra.mxu2 %vm4513_vm2, %v3152_v57 }
 0x234   : > { %2388 = vrot.lane.b32.xlu2 %v4152_v34, %s2992_s21 }
 0x236   : > { %v2196_v37 = vpop.f32.mrf.mxu1 }
 0x237   : > { %v2197_v55 = vadd.f32 %v4094_v41, %v2196_v37 }
 0x239   : > { %v4172_v60 = vmax.f32 %v2197_v55, 0.0 }
 0x23b   : > { %2328 = vrot.lane.b32.xlu0 %v4172_v60, %s2990_s14  ;;  %2264 = vrot.lane.b32.xlu1 %v4172_v60, %s2991_s20 }
 0x23e   : > { %v2198_v32 = vpop.f32.mrf.mxu1 }
 0x23f   : > { %v2199_v56 = vadd.f32 %v4094_v41, %v2198_v32 }
 0x241   : > { %v4179_v31 = vmax.f32 %v2199_v56, 0.0  ;;  %2868 = vmatmul.msk.bf16.gmra.mxu2 %vm4514_vm15, %v3158_v0 }
 0x243   : > { %2266 = vrot.lane.b32.xlu2 %v4179_v31, %s2991_s20  ;;  %2394 = vrot.lane.b32.xlu0 %v4179_v31, %s2992_s21 }
 0x244   : > { %2330 = vrot.lane.b32.xlu1 %v4179_v31, %s2990_s14 }
 0x246   : > { %v2201_v17 = vpop.f32.mrf.mxu1 }
 0x247   : > { %v2202_v16 = vadd.f32 %v4094_v41, %v2201_v17 }
 0x249   : > { %v4188_v42 = vmax.f32 %v2202_v16, 0.0 }
 0x24b   : > { %2392 = vrot.lane.b32.xlu2 %v4172_v60, %s2992_s21  ;;  %2332 = vrot.lane.b32.xlu0 %v4188_v42, %s2990_s14 }
 0x24c   : > { %2268 = vrot.lane.b32.xlu1 %v4188_v42, %s2991_s20 }
 0x24e   : > { %v2203_v26 = vpop.f32.mrf.mxu1  ;;  %v2251_v7 = vpop.permute.xlu2 %2250 }
 0x24f   : > { %v2204_v20 = vadd.f32 %v4094_v41, %v2203_v26  ;;  %v2297_v61 = vadd.f32 %v2251_v7, %v4107_v46 }
 0x251   : > { %v4205_v50 = vmax.f32 %v2204_v20, 0.0  ;;  %2869 = vmatmul.msk.bf16.gmra.mxu2 %vm4515_vm6, %v3172_v10 }
 0x253   : > { %2270 = vrot.lane.b32.xlu2 %v4205_v50, %s2991_s20  ;;  %2398 = vrot.lane.b32.xlu0 %v4205_v50, %s2992_s21 }
 0x254   : > { %2334 = vrot.lane.b32.xlu1 %v4205_v50, %s2990_s14 }
 0x256   : > { %v2206_v21 = vpop.f32.mrf.mxu1  ;;  %v2377_v52 = vpop.permute.xlu2 %2376 }
 0x257   : > { %v2207_v14 = vadd.f32 %v4094_v41, %v2206_v21 }
 0x259   : > { %v4216_v3 = vmax.f32 %v2207_v14, 0.0 }
 0x25b   : > { %2396 = vrot.lane.b32.xlu2 %v4188_v42, %s2992_s21  ;;  %2336 = vrot.lane.b32.xlu0 %v4216_v3, %s2990_s14 }
 0x25c   : > { %2272 = vrot.lane.b32.xlu1 %v4216_v3, %s2991_s20 }
 0x25e   : > { %v2249_v15 = vpop.permute.xlu1 %2248  ;;  %v2313_v58 = vpop.permute.xlu0 %2312 }
 0x25f   : > { %v2208_v13 = vpop.f32.mrf.mxu1  ;;  %v2296_v33 = vadd.f32 %v2249_v15, %v4100_v62  ;;  %v2255_v62 = vpop.permute.xlu2 %2254 }
 0x260   : > { %v2209_v24 = vadd.f32 %v4094_v41, %v2208_v13  ;;  %v2299_v27 = vadd.f32 %v2255_v62, %v4125_v38 }
 0x261   : > { %v2360_v8 = vadd.f32 %v2313_v58, %v2296_v33 }
 0x262   : > { %v4228_v45 = vmax.f32 %v2209_v24, 0.0 }
 0x263   : > { %v2424_v51 = vadd.f32 %v2377_v52, %v2360_v8 }
 0x264   : > { %2274 = vrot.lane.b32.xlu2 %v4228_v45, %s2991_s20  ;;  %2402 = vrot.lane.b32.xlu0 %v4228_v45, %s2992_s21 }
 0x265   : > { %2338 = vrot.lane.b32.xlu1 %v4228_v45, %s2990_s14 }
 0x266   : > { %v2379_v28 = vpop.permute.xlu0 %2378 }
 0x267   : > { %v2315_v54 = vpop.permute.xlu1 %2314  ;;  %v2211_v40 = vpop.f32.mrf.mxu1 }
 0x268   : > { %v2361_v22 = vadd.f32 %v2315_v54, %v2297_v61  ;;  %v2212_v2 = vadd.f32 %v4094_v41, %v2211_v40  ;;  %v2381_v18 = vpop.permute.xlu2 %2380 }
 0x26a   : > { %v2425_v1 = vadd.f32 %v2379_v28, %v2361_v22  ;;  %v4238_v25 = vmax.f32 %v2212_v2, 0.0 }
 0x26c   : > { %v2440_v9 = vpack.c.bf16 %v2425_v1, %v2424_v51  ;;  %2400 = vrot.lane.b32.xlu2 %v4216_v3, %s2992_s21  ;;  %2340 = vrot.lane.b32.xlu0 %v4238_v25, %s2990_s14 }
 0x26d   : > { %2276 = vrot.lane.b32.xlu1 %v4238_v25, %s2991_s20 }
 0x26e   : > { %2870 = vmatmul.msk.bf16.vlgmr.msra.gmra.mxu3 %vm1987_vm12, %v2440_v9  ;;  %v2317_v46 = vpop.permute.xlu0 %2316 }
 0x26f   : > { %v2213_v63 = vpop.f32.mrf.mxu1  ;;  %v2253_v30 = vpop.permute.xlu1 %2252 }
 0x270   : > { %v2214_v12 = vadd.f32 %v4094_v41, %v2213_v63  ;;  %v2298_v47 = vadd.f32 %v2253_v30, %v4116_v39 }
 0x272   : > { %v4250_v6 = vmax.f32 %v2214_v12, 0.0  ;;  %v2362_v41 = vadd.f32 %v2317_v46, %v2298_v47 }
 0x274   : > { %2278 = vrot.lane.b32.xlu2 %v4250_v6, %s2991_s20  ;;  %2406 = vrot.lane.b32.xlu0 %v4250_v6, %s2992_s21  ;;  %v2426_v11 = vadd.f32 %v2381_v18, %v2362_v41 }
 0x275   : > { %2342 = vrot.lane.b32.xlu1 %v4250_v6, %s2990_s14  ;;  %v2259_v37 = vpop.permute.xlu2 %2258 }
 0x276   : > { %v2383_v29 = vpop.permute.xlu0 %2382  ;;  %v2301_v17 = vadd.f32 %v2259_v37, %v4143_v5 }
 0x277   : > { %v2319_v59 = vpop.permute.xlu1 %2318 }
 0x278   : > { %v2363_v4 = vadd.f32 %v2319_v59, %v2299_v27 }
 0x27a   : > { %v2427_v53 = vadd.f32 %v2383_v29, %v2363_v4 }
 0x27c   : > { %2404 = vrot.lane.b32.xlu2 %v4238_v25, %s2992_s21  ;;  %v2441_v39 = vpack.c.bf16 %v2427_v53, %v2426_v11 }
 0x27d   : > { %v2385_v56 = vpop.permute.xlu2 %2384 }
 0x27e   : > { %2871 = vmatmul.msk.bf16.gmra.mxu3 %vm1987_vm12, %v2441_v39 }
 0x285   : > { %v2321_v55 = vpop.permute.xlu0 %2320  ;;  %v2257_v32 = vpop.permute.xlu1 %2256 }
 0x286   : > { %v2300_v38 = vadd.f32 %v2257_v32, %v4136_v48  ;;  %v2263_v44 = vpop.permute.xlu2 %2262 }
 0x287   : > { %v2303_v5 = vadd.f32 %v2263_v44, %v4161_v19 }
 0x288   : > { %v2364_v16 = vadd.f32 %v2321_v55, %v2300_v38 }
 0x28a   : > { %v2428_v26 = vadd.f32 %v2385_v56, %v2364_v16 }
 0x28d   : > { %v2387_v23 = vpop.permute.xlu0 %2386 }
 0x28e   : > { %v2323_v49 = vpop.permute.xlu1 %2322  ;;  %v2389_v14 = vpop.permute.xlu2 %2388 }
 0x28f   : > { %v2365_v35 = vadd.f32 %v2323_v49, %v2301_v17 }
 0x291   : > { %v2429_v20 = vadd.f32 %v2387_v23, %v2365_v35  ;;  %v2462_v35 = vpop.f32.mrf.mxu2 }
 0x293   : > { %v2442_v7 = vpack.c.bf16 %v2429_v20, %v2428_v26 }
 0x295   : > { %2872 = vmatmul.msk.bf16.gmra.mxu3 %vm1987_vm12, %v2442_v7 }
 0x296   : > { %v2261_v36 = vpop.permute.xlu1 %2260  ;;  %v2325_v21 = vpop.permute.xlu0 %2324 }
 0x297   : > { %v2302_v48 = vadd.f32 %v2261_v36, %v4152_v34 }
 0x299   : > { %v2366_v15 = vadd.f32 %v2325_v21, %v2302_v48  ;;  %v2464_v48 = vpop.f32.mrf.mxu2 }
 0x29b   : > { %v2430_v24 = vadd.f32 %v2389_v14, %v2366_v15 }
 0x29d   : > { %v2267_v33 = vpop.permute.xlu2 %2266 }
 0x29e   : > { %v2391_v52 = vpop.permute.xlu0 %2390  ;;  %v2305_v19 = vadd.f32 %v2267_v33, %v4179_v31 }
 0x29f   : > { %v2327_v58 = vpop.permute.xlu1 %2326 }
 0x2a0   : > { %v2367_v13 = vadd.f32 %v2327_v58, %v2303_v5  ;;  %v4294_v5 = vld [vmem:[%s4374_s9] ss:$0 sm:$0xff] }
 0x2a2   : > { %v2431_v43 = vadd.f32 %v2391_v52, %v2367_v13 }
 0x2a4   : > { %v2443_v61 = vpack.c.bf16 %v2431_v43, %v2430_v24  ;;  %v2467_v24 = vpop.f32.mrf.mxu2 }
 0x2a5   : > { %v2393_v8 = vpop.permute.xlu2 %2392 }
 0x2a6   : > { %2873 = vmatmul.msk.bf16.gmra.mxu3 %vm1987_vm12, %v2443_v61 }
 0x2ad   : > { %v2329_v28 = vpop.permute.xlu0 %2328  ;;  %v2265_v54 = vpop.permute.xlu1 %2264 }
 0x2ae   : > { %v2304_v34 = vadd.f32 %v2265_v54, %v4172_v60  ;;  %v2271_v2 = vpop.permute.xlu2 %2270 }
 0x2af   : > { %v2307_v0 = vadd.f32 %v2271_v2, %v4205_v50 }
 0x2b0   : > { %v2368_v40 = vadd.f32 %v2329_v28, %v2304_v34  ;;  %v2469_v34 = vpop.f32.mrf.mxu2 }
 0x2b2   : > { %v2432_v62 = vadd.f32 %v2393_v8, %v2368_v40 }
 0x2b5   : > { %v2395_v22 = vpop.permute.xlu0 %2394 }
 0x2b6   : > { %v2331_v57 = vpop.permute.xlu1 %2330  ;;  %v2397_v30 = vpop.permute.xlu2 %2396 }
 0x2b7   : > { %v2369_v51 = vadd.f32 %v2331_v57, %v2305_v19 }
 0x2b9   : > { %v2433_v1 = vadd.f32 %v2395_v22, %v2369_v51  ;;  %v2472_v51 = vpop.f32.mrf.mxu2 }
 0x2bb   : > { %v2444_v9 = vpack.c.bf16 %v2433_v1, %v2432_v62 }
 0x2bd   : > { %2874 = vmatmul.msk.bf16.gmra.mxu3 %vm1987_vm12, %v2444_v9  ;;  %v2333_v46 = vpop.permute.xlu0 %2332 }
 0x2be   : > { %v2269_v63 = vpop.permute.xlu1 %2268  ;;  %v2275_v59 = vpop.permute.xlu2 %2274 }
 0x2bf   : > { %v2306_v60 = vadd.f32 %v2269_v63, %v4188_v42  ;;  %v2309_v37 = vadd.f32 %v2275_v59, %v4228_v45 }
 0x2c1   : > { %v2370_v31 = vadd.f32 %v2333_v46, %v2306_v60  ;;  %v2474_v46 = vpop.f32.mrf.mxu2 }
 0x2c3   : > { %v2434_v27 = vadd.f32 %v2397_v30, %v2370_v31 }
 0x2c5   : > { %v2399_v12 = vpop.permute.xlu0 %2398 }
 0x2c6   : > { %v2335_v47 = vpop.permute.xlu1 %2334  ;;  %v2401_v42 = vpop.permute.xlu2 %2400 }
 0x2c7   : > { %v2371_v18 = vadd.f32 %v2335_v47, %v2307_v0 }
 0x2c9   : > { %v2435_v41 = vadd.f32 %v2399_v12, %v2371_v18  ;;  %v2477_v12 = vpop.f32.mrf.mxu2 }
 0x2cb   : > { %v2445_v4 = vpack.c.bf16 %v2435_v41, %v2434_v27 }
 0x2cd   : > { %2875 = vmatmul.msk.bf16.gmra.mxu3 %vm1987_vm12, %v2445_v4  ;;  %v2337_v29 = vpop.permute.xlu0 %2336 }
 0x2ce   : > { %v2273_v11 = vpop.permute.xlu1 %2272  ;;  %v2279_v17 = vpop.permute.xlu2 %2278 }
 0x2cf   : > { %v2308_v53 = vadd.f32 %v2273_v11, %v4216_v3  ;;  %v2311_v3 = vadd.f32 %v2279_v17, %v4250_v6 }
 0x2d1   : > { %v2372_v10 = vadd.f32 %v2337_v29, %v2308_v53  ;;  %v2479_v29 = vpop.f32.mrf.mxu2 }
 0x2d3   : > { %v2436_v32 = vadd.f32 %v2401_v42, %v2372_v10 }
 0x2d6   : > { %v2403_v39 = vpop.permute.xlu0 %2402  ;;  %v2405_v20 = vpop.permute.xlu2 %2404 }
 0x2d7   : > { %v2339_v50 = vpop.permute.xlu1 %2338 }
 0x2d8   : > { %v2373_v55 = vadd.f32 %v2339_v50, %v2309_v37 }
 0x2d9   : > { %v2482_v50 = vpop.f32.mrf.mxu2 }
 0x2da   : > { %v2437_v56 = vadd.f32 %v2403_v39, %v2373_v55 }
 0x2dc   : > { %v2446_v38 = vpack.c.bf16 %v2437_v56, %v2436_v32 }
 0x2de   : > { %2876 = vmatmul.msk.bf16.gmra.mxu3 %vm1987_vm12, %v2446_v38  ;;  %v2341_v16 = vpop.permute.xlu0 %2340 }
 0x2df   : > { %v2277_v23 = vpop.permute.xlu1 %2276 }
 0x2e0   : > { %v2310_v49 = vadd.f32 %v2277_v23, %v4238_v25 }
 0x2e1   : > { %v2484_v38 = vpop.f32.mrf.mxu2 }
 0x2e2   : > { %v2374_v44 = vadd.f32 %v2341_v16, %v2310_v49 }
 0x2e4   : > { %v2438_v36 = vadd.f32 %v2405_v20, %v2374_v44 }
 0x2e6   : > { %v2407_v7 = vpop.permute.xlu0 %2406 }
 0x2e7   : > { %v2343_v45 = vpop.permute.xlu1 %2342 }
 0x2e8   : > { %v2375_v26 = vadd.f32 %v2343_v45, %v2311_v3 }
 0x2e9   : > { %v2487_v3 = vpop.f32.mrf.mxu2 }
 0x2ea   : > { %v2439_v21 = vadd.f32 %v2407_v7, %v2375_v26 }
 0x2ec   : > { %v2447_v14 = vpack.c.bf16 %v2439_v21, %v2438_v36 }
 0x2ee   : > { %2877 = vmatmul.msk.bf16.gmra.mxu3 %vm1987_vm12, %v2447_v14  ;;  %vm2630_vm12 = vcmask 60416  }
 0x2f1   : > { %v2538_v25 = vpop.f32.mrf.mxu3  ;;  %v2489_v21 = vpop.f32.mrf.mxu2 }
 0x2f2   : > { %v2539_v15 = vadd.f32 %v2538_v25, %v2462_v35 }
 0x2f4   : > { %v2582_v6 = vadd.f32 %v4294_v5, %v2539_v15 }
 0x2f6   : > { %v2598_v58 = vmax.f32 %v2582_v6, 0.0 }
 0x2f8   : > { %v2614_v13 = vpack.c.bf16 %v2598_v58, %v2598_v58 }
 0x2f9   : > { %v2540_v52 = vpop.f32.mrf.mxu3 }
 0x2fa   : > { %2631 = vst.msk [vmem:[%s4301_s3] sm:$0xf] %vm2630_vm12, %v2614_v13  ;;  %v2541_v33 = vadd.f32 %v2540_v52, %v2464_v48  ;;  %v2492_v13 = vpop.f32.mrf.mxu2 }
 0x2fc   : > { %v2583_v43 = vadd.f32 %v4294_v5, %v2541_v33 }
 0x2fe   : > { %v2599_v61 = vmax.f32 %v2583_v43, 0.0 }
 0x300   : > { %v2615_v8 = vpack.c.bf16 %v2599_v61, %v2599_v61 }
 0x301   : > { %v2543_v28 = vpop.f32.mrf.mxu3 }
 0x302   : > { %2632 = vst.msk [vmem:[%s4301_s3 + $0x4] sm:$0xf] %vm2630_vm12, %v2615_v8  ;;  %v2544_v54 = vadd.f32 %v2543_v28, %v2467_v24  ;;  %v2494_v28 = vpop.f32.mrf.mxu2 }
 0x304   : > { %v2584_v19 = vadd.f32 %v4294_v5, %v2544_v54 }
 0x306   : > { %v2600_v40 = vmax.f32 %v2584_v19, 0.0 }
 0x308   : > { %v2616_v22 = vpack.c.bf16 %v2600_v40, %v2600_v40 }
 0x309   : > { %v2545_v2 = vpop.f32.mrf.mxu3 }
 0x30a   : > { %2633 = vst.msk [vmem:[%s4301_s3 + $0x8] sm:$0xf] %vm2630_vm12, %v2616_v22  ;;  %v2546_v57 = vadd.f32 %v2545_v2, %v2469_v34 }
 0x30c   : > { %v2585_v62 = vadd.f32 %v4294_v5, %v2546_v57  ;;  %v2497_v57 = vpop.f32.mrf.mxu2 }
 0x30e   : > { %v2601_v1 = vmax.f32 %v2585_v62, 0.0 }
 0x310   : > { %v2617_v9 = vpack.c.bf16 %v2601_v1, %v2601_v1 }
 0x312   : > { %2634 = vst.msk [vmem:[%s4301_s3 + $0xc] sm:$0xf] %vm2630_vm12, %v2617_v9 }
 0x318   : > { %v2548_v63 = vpop.f32.mrf.mxu3 }
 0x319   : > { %v2549_v30 = vadd.f32 %v2548_v63, %v2472_v51 }
 0x31b   : > { %v2586_v60 = vadd.f32 %v4294_v5, %v2549_v30  ;;  %v2499_v30 = vpop.f32.mrf.mxu2 }
 0x31d   : > { %v2602_v0 = vmax.f32 %v2586_v60, 0.0 }
 0x31f   : > { %v2618_v31 = vpack.c.bf16 %v2602_v0, %v2602_v0 }
 0x320   : > { %v2550_v47 = vpop.f32.mrf.mxu3 }
 0x321   : > { %2635 = vst.msk [vmem:[%s4301_s3 + $0x10] sm:$0xf] %vm2630_vm12, %v2618_v31  ;;  %v2551_v18 = vadd.f32 %v2550_v47, %v2474_v46 }
 0x323   : > { %v2587_v27 = vadd.f32 %v4294_v5, %v2551_v18 }
 0x325   : > { %v2603_v41 = vmax.f32 %v2587_v27, 0.0 }
 0x327   : > { %v2619_v59 = vpack.c.bf16 %v2603_v41, %v2603_v41 }
 0x329   : > { %2636 = vst.msk [vmem:[%s4301_s3 + $0x14] sm:$0xf] %vm2630_vm12, %v2619_v59  ;;  %v2553_v4 = vpop.f32.mrf.mxu3 }
 0x32a   : > { %v2554_v11 = vadd.f32 %v2553_v4, %v2477_v12 }
 0x32c   : > { %v2588_v53 = vadd.f32 %v4294_v5, %v2554_v11 }
 0x32e   : > { %v2604_v42 = vmax.f32 %v2588_v53, 0.0 }
 0x330   : > { %v2620_v37 = vpack.c.bf16 %v2604_v42, %v2604_v42 }
 0x331   : > { %v2555_v10 = vpop.f32.mrf.mxu3 }
 0x332   : > { %2637 = vst.msk [vmem:[%s4301_s3 + $0x18] sm:$0xf] %vm2630_vm12, %v2620_v37  ;;  %v2556_v39 = vadd.f32 %v2555_v10, %v2479_v29 }
 0x334   : > { %v2589_v55 = vadd.f32 %v4294_v5, %v2556_v39 }
 0x336   : > { %v2605_v32 = vmax.f32 %v2589_v55, 0.0 }
 0x338   : > { %v2621_v56 = vpack.c.bf16 %v2605_v32, %v2605_v32 }
 0x33a   : > { %2638 = vst.msk [vmem:[%s4301_s3 + $0x1c] sm:$0xf] %vm2630_vm12, %v2621_v56 }
 0x340   : > { %v2558_v17 = vpop.f32.mrf.mxu3 }
 0x341   : > { %v2559_v16 = vadd.f32 %v2558_v17, %v2482_v50 }
 0x343   : > { %v2590_v23 = vadd.f32 %v4294_v5, %v2559_v16 }
 0x345   : > { %v2606_v49 = vmax.f32 %v2590_v23, 0.0 }
 0x347   : > { %v2622_v35 = vpack.c.bf16 %v2606_v49, %v2606_v49 }
 0x348   : > { %v2560_v44 = vpop.f32.mrf.mxu3 }
 0x349   : > { %2639 = vst.msk [vmem:[%s4301_s3 + $0x20] sm:$0xf] %vm2630_vm12, %v2622_v35  ;;  %v2561_v45 = vadd.f32 %v2560_v44, %v2484_v38 }
 0x34b   : > { %v2591_v26 = vadd.f32 %v4294_v5, %v2561_v45 }
 0x34d   : > { %v2607_v20 = vmax.f32 %v2591_v26, 0.0 }
 0x34f   : > { %v2623_v7 = vpack.c.bf16 %v2607_v20, %v2607_v20 }
 0x350   : > { %v2563_v36 = vpop.f32.mrf.mxu3 }
 0x351   : > { %2640 = vst.msk [vmem:[%s4301_s3 + $0x24] sm:$0xf] %vm2630_vm12, %v2623_v7  ;;  %v2564_v14 = vadd.f32 %v2563_v36, %v2487_v3 }
 0x353   : > { %v2592_v48 = vadd.f32 %v4294_v5, %v2564_v14 }
 0x355   : > { %v2608_v25 = vmax.f32 %v2592_v48, 0.0 }
 0x357   : > { %v2624_v15 = vpack.c.bf16 %v2608_v25, %v2608_v25 }
 0x358   : > { %v2565_v6 = vpop.f32.mrf.mxu3 }
 0x359   : > { %2641 = vst.msk [vmem:[%s4301_s3 + $0x28] sm:$0xf] %vm2630_vm12, %v2624_v15  ;;  %v2566_v58 = vadd.f32 %v2565_v6, %v2489_v21 }
 0x35b   : > { %v2593_v52 = vadd.f32 %v4294_v5, %v2566_v58 }
 0x35d   : > { %v2609_v24 = vmax.f32 %v2593_v52, 0.0 }
 0x35f   : > { %v2625_v33 = vpack.c.bf16 %v2609_v24, %v2609_v24 }
 0x361   : > { %2642 = vst.msk [vmem:[%s4301_s3 + $0x2c] sm:$0xf] %vm2630_vm12, %v2625_v33  ;;  %v2568_v43 = vpop.f32.mrf.mxu3 }
 0x362   : > { %v2569_v61 = vadd.f32 %v2568_v43, %v2492_v13 }
 0x364   : > { %v2594_v8 = vadd.f32 %v4294_v5, %v2569_v61 }
 0x366   : > { %v2610_v54 = vmax.f32 %v2594_v8, 0.0 }
 0x368   : > { %v2626_v34 = vpack.c.bf16 %v2610_v54, %v2610_v54 }
 0x369   : > { %v2570_v19 = vpop.f32.mrf.mxu3 }
 0x36a   : > { %2643 = vst.msk [vmem:[%s4301_s3 + $0x30] sm:$0xf] %vm2630_vm12, %v2626_v34  ;;  %v2571_v40 = vadd.f32 %v2570_v19, %v2494_v28 }
 0x36c   : > { %v2595_v22 = vadd.f32 %v4294_v5, %v2571_v40 }
 0x36e   : > { %v2611_v2 = vmax.f32 %v2595_v22, 0.0 }
 0x370   : > { %v2627_v51 = vpack.c.bf16 %v2611_v2, %v2611_v2 }
 0x371   : > { %v2573_v62 = vpop.f32.mrf.mxu3 }
 0x372   : > { %2644 = vst.msk [vmem:[%s4301_s3 + $0x34] sm:$0xf] %vm2630_vm12, %v2627_v51  ;;  %v2574_v1 = vadd.f32 %v2573_v62, %v2497_v57 }
 0x374   : > { %v2596_v9 = vadd.f32 %v4294_v5, %v2574_v1 }
 0x376   : > { %v2612_v46 = vmax.f32 %v2596_v9, 0.0 }
 0x378   : > { %v2628_v63 = vpack.c.bf16 %v2612_v46, %v2612_v46 }
 0x379   : > { %v2575_v60 = vpop.f32.mrf.mxu3 }
 0x37a   : > { %2645 = vst.msk [vmem:[%s4301_s3 + $0x38] sm:$0xf] %vm2630_vm12, %v2628_v63  ;;  %v2576_v0 = vadd.f32 %v2575_v60, %v2499_v30 }
 0x37c   : > { %v2597_v31 = vadd.f32 %v4294_v5, %v2576_v0 }
 0x37e   : > { %v2613_v12 = vmax.f32 %v2597_v31, 0.0 }
 0x380   : > { %v2629_v47 = vpack.c.bf16 %v2613_v12, %v2613_v12 }
 0x382   : > { %2646 = vst.msk [vmem:[%s4301_s3 + $0x3c] sm:$0xf] %vm2630_vm12, %v2629_v47 }
 0x383 PF: > { %s20_s17 = sadd.s32 1, %s2978_s17   ;;  %s4516_s13 = smov %s2970_s15 }
 0x384   : > { %p17_p12 = scmp.ge.s32.totalorder %s20_s17, 6   ;;  %s4517_s14 = smov %s2974_s16 }
 0x385   : > { %s4518_s15 = smov %s4521_s18  ;;  %s4519_s16 = smov %s4525_s19 }
 0x386   :  { %19 = sbr.rel (!%p17_p12) target bundleno = 3 (0x3), region = 96 }

</bundles_post_ra>
